<compile_context>
chip_gen: v5e
topology: v5e:2x2
jax: 0.10.0
libtpu: 0.0.40
codegen_flags: <defaults>
</compile_context>

<pallas_src>
from typing import NamedTuple, Optional

import jax
import jax.numpy as jnp
from jax import lax
from jax.experimental import pallas as pl
from jax.experimental.pallas import tpu as pltpu

# ----------------------------- configuration -------------------------------
BATCH = 2
EDGE_WIDTH = 16                  # hex map edge width (small demo size)
HW = EDGE_WIDTH * EDGE_WIDTH     # 256 -> lane axis (2 x 128 lanes)
NUM_ROTATIONS = 6                # len(ROTATIONS)
ENV_RAW_CHANNELS = 6             # raw environment property channels
ENV_EMBED_CHANNELS = 8           # EnvironmentEmbedder.get_entire_embedding_size()
GROUNDING_CHANNELS = 4           # config.grounding_map_channels
LINGUNET_IN_CHANNELS = ENV_EMBED_CHANNELS + GROUNDING_CHANNELS   # 12
LINGUNET_OUT_CHANNELS = NUM_ROTATIONS
NUM_ADDITIONAL_PIXELS = 1        # STOP only (no copy / gating / direct actions)
TEXT_HIDDEN = 32                 # instruction_encoder_config.hidden_size
TOKEN_EMBED = 16
VOCAB = 50
SEQ_LEN = 8

# fused instruction-head layout: [grounding text kernel | lingunet text kernel | STOP]
_TK_SIZE = GROUNDING_CHANNELS * ENV_EMBED_CHANNELS            # 32
_LING_SIZE = LINGUNET_OUT_CHANNELS * LINGUNET_IN_CHANNELS     # 72
_STOP_IDX = _TK_SIZE + _LING_SIZE                             # 104
_HEADS = _STOP_IDX + NUM_ADDITIONAL_PIXELS                    # 105
_HEADS_PAD = 128                                              # lane-dense pad


class VoxelPredictions(NamedTuple):
    voxel_probabilities: jnp.ndarray           # (B, R, E, E)
    stop_probabilities: jnp.ndarray            # (B,)
    copy_probabilities: Optional[jnp.ndarray]  # None (copy_action=False)
    global_interpretation: bool


# ------------------------------ fused kernel --------------------------------
def _fused_forward_kernel(
    emb_ref,      # (S*B, E_tok) f32  token embeddings, row t*B + b (time-major)
    seqlen_ref,   # (B, 1)       int32 sequence lengths
    wx_ref,       # (E_tok, H)   RNN input weight
    wh_ref,       # (H, H)       RNN recurrent weight
    rb_ref,       # (1, H)       RNN bias
    hw_ref,       # (H, 128)     fused instruction-head weight (zero-padded)
    hb_ref,       # (1, 128)     fused instruction-head bias   (zero-padded)
    envw_ref,     # (B*LIN, B*Craw) block-diag env 1x1 conv weight (gap rows 0)
    envb_ref,     # (B*LIN, 1)      block-diag env bias            (gap rows 0)
    envx_ref,     # (B*Craw, HW) raw environment tensors, HW on lanes
    voxel_ref,    # out (B*R, HW) f32  voxel probabilities
    stop_ref,     # out (B, 1)    f32  STOP probabilities
    tkg_scr,      # scratch (B*Cg, B*LIN)  block-diag grounding text kernels
    tkl_scr,      # scratch (B*R,  B*LIN)  block-diag lingunet  text kernels
    lin_scr,      # scratch (B*LIN, HW)    concat([env_emb, grounding]) per example
):
    B = stop_ref.shape[0]
    R = LINGUNET_OUT_CHANNELS
    Ce = ENV_EMBED_CHANNELS
    Cg = GROUNDING_CHANNELS
    LIN = LINGUNET_IN_CHANNELS

    # ---- SentenceEncoder stand-in: tanh RNN, hidden taken at seq_len - 1 ----
    # Input projection hoisted out of the recurrence: one big dot, bias folded
    # in, so the dependent per-step chain is only (h @ wh) + tanh.
    xproj = (jnp.dot(emb_ref[...], wx_ref[...],
                     preferred_element_type=jnp.float32)
             + rb_ref[...])                              # (S*B, H)
    wh = wh_ref[...]
    last_idx = seqlen_ref[...] - 1                       # (B, 1) int32
    h = jnp.zeros((B, TEXT_HIDDEN), jnp.float32)
    instr = jnp.zeros((B, TEXT_HIDDEN), jnp.float32)
    for t in range(SEQ_LEN):                             # static unroll (S = 8)
        x_t = xproj[t * B:(t + 1) * B, :]                # (B, H)
        h = jnp.tanh(x_t + jnp.dot(h, wh, preferred_element_type=jnp.float32))
        instr = jnp.where(last_idx == t, h, instr)       # hidden at seq_len-1

    # ---- all instruction heads in one lane-dense matmul: (B,32) @ (32,128) ----
    heads = (jnp.dot(instr, hw_ref[...], preferred_element_type=jnp.float32)
             + hb_ref[...])                              # (B, 128)

    # ---- unflatten per-example 1x1-conv text kernels into BLOCK-DIAGONAL
    #      scratches so the whole batch shares each downstream matmul.
    #      Off-block entries must be exact zeros (scratch VMEM is uninitialized).
    tkg_scr[...] = jnp.zeros_like(tkg_scr)
    tkl_scr[...] = jnp.zeros_like(tkl_scr)
    for b in range(B):
        hrow = heads[b:b + 1, :]                         # (1, 128)
        col0 = b * LIN
        for g in range(Cg):
            tkg_scr[pl.ds(b * Cg + g, 1), pl.ds(col0, Ce)] = \
                hrow[:, g * Ce:(g + 1) * Ce]
        for r in range(R):                               # one 12-lane store / row
            s = _TK_SIZE + r * LIN
            tkl_scr[pl.ds(b * R + r, 1), pl.ds(col0, LIN)] = hrow[:, s:s + LIN]

    # ---- EnvironmentEmbedder stand-in (shared 1x1 conv), both examples in ONE
    #      dot via the block-diagonal weight; grounding gap rows stay 0.
    lin_scr[...] = (jnp.dot(envw_ref[...], envx_ref[...],
                            preferred_element_type=jnp.float32)
                    + envb_ref[...])                     # (B*LIN, HW)

    # ---- grounding map: per-example text-generated 1x1 conv (no bias),
    #      both examples in one dot; results fill the concat gap rows.
    grounding = jnp.dot(tkg_scr[...], lin_scr[...],
                        preferred_element_type=jnp.float32)   # (B*Cg, HW)
    for b in range(B):
        lin_scr[pl.ds(b * LIN + Ce, Cg), :] = grounding[b * Cg:(b + 1) * Cg, :]

    # ---- LingUNet stand-in applied to concat([env_emb, grounding]): ONE dot.
    images = jnp.dot(tkl_scr[...], lin_scr[...],
                     preferred_element_type=jnp.float32)      # (B*R, HW)

    # ---- joint softmax over [voxel logits, STOP] per example, batched.
    # The voxel block stays lane-dense (no 1537-wide array); the shift uses the
    # global max across the batch (softmax is shift-invariant per example).
    stop_logits = heads[:, _STOP_IDX:_STOP_IDX + 1]           # (B, 1)
    m = jnp.maximum(jnp.max(images), jnp.max(stop_logits))    # scalar
    e_img = jnp.exp(images - m)                               # (B*R, HW)
    e_stop = jnp.exp(stop_logits - m)                         # (B, 1)
    lane_sum = jnp.sum(e_img, axis=1, keepdims=True)          # (B*R, 1)

    row_ids = lax.broadcasted_iota(jnp.int32, (B * R, 1), 0)  # (B*R, 1)
    ex_ids = lax.broadcasted_iota(jnp.int32, (B, 1), 0)       # (B, 1)
    inv_rows = jnp.zeros((B * R, 1), jnp.float32)
    inv_ex = jnp.zeros((B, 1), jnp.float32)
    for b in range(B):                                        # scalar-only per-b work
        in_b = (row_ids >= b * R) & (row_ids < (b + 1) * R)   # (B*R, 1) bool
        denom_b = (jnp.sum(jnp.where(in_b, lane_sum, 0.0))
                   + e_stop[b:b + 1, 0:1])                    # (1, 1)
        inv_b = 1.0 / denom_b                                 # exact divide
        inv_rows = jnp.where(in_b, inv_b, inv_rows)
        inv_ex = jnp.where(ex_ids == b, inv_b, inv_ex)

    voxel_ref[...] = e_img * inv_rows                         # (B*R, HW)
    stop_ref[...] = e_stop * inv_ex                           # (B, 1)


def _full_spec(shape):
    return pl.BlockSpec(shape, lambda i: (0,) * len(shape))


def fused_forward(params, emb2d, seq_lens2d, envw_big, envb_big, env_flat):
    SB, E = emb2d.shape
    B = seq_lens2d.shape[0]
    # grid=(1,): single-TensorCore, launch/latency-bound kernel; footprint ~60 KiB.
    # TODO(synk): on v7x the batch axis could be sharded across the 2 TensorCores.
    voxel, stop = pl.pallas_call(
        _fused_forward_kernel,
        out_shape=(
            jax.ShapeDtypeStruct((B * LINGUNET_OUT_CHANNELS, HW), jnp.float32),
            jax.ShapeDtypeStruct((B, 1), jnp.float32),
        ),
        grid=(1,),
        in_specs=[
            _full_spec((SB, E)),
            _full_spec((B, 1)),
            _full_spec((TOKEN_EMBED, TEXT_HIDDEN)),
            _full_spec((TEXT_HIDDEN, TEXT_HIDDEN)),
            _full_spec((1, TEXT_HIDDEN)),
            _full_spec((TEXT_HIDDEN, _HEADS_PAD)),
            _full_spec((1, _HEADS_PAD)),
            _full_spec((B * LINGUNET_IN_CHANNELS, B * ENV_RAW_CHANNELS)),
            _full_spec((B * LINGUNET_IN_CHANNELS, 1)),
            _full_spec((B * ENV_RAW_CHANNELS, HW)),
        ],
        out_specs=(
            _full_spec((B * LINGUNET_OUT_CHANNELS, HW)),
            _full_spec((B, 1)),
        ),
        scratch_shapes=[
            pltpu.VMEM((B * GROUNDING_CHANNELS, B * LINGUNET_IN_CHANNELS),
                       jnp.float32),
            pltpu.VMEM((B * LINGUNET_OUT_CHANNELS, B * LINGUNET_IN_CHANNELS),
                       jnp.float32),
            pltpu.VMEM((B * LINGUNET_IN_CHANNELS, HW), jnp.float32),
        ],
        compiler_params=pltpu.CompilerParams(
            dimension_semantics=("arbitrary",)),
    )(emb2d, seq_lens2d,
      params["rnn_wx"], params["rnn_wh"], params["rnn_b2d"],
      params["heads_w"], params["heads_b"],
      envw_big, envb_big, env_flat)
    return voxel, stop


# ------------------------------ parameters ----------------------------------
def init_params(key):
    ks = jax.random.split(key, 10)
    s = 0.1
    token_embedding = s * jax.random.normal(ks[0], (VOCAB, TOKEN_EMBED), jnp.float32)
    rnn_wx = s * jax.random.normal(ks[1], (TOKEN_EMBED, TEXT_HIDDEN), jnp.float32)
    rnn_wh = s * jax.random.normal(ks[2], (TEXT_HIDDEN, TEXT_HIDDEN), jnp.float32)
    rnn_b = jnp.zeros((TEXT_HIDDEN,), jnp.float32)
    # EnvironmentEmbedder stand-in (shared 1x1 conv over raw property maps).
    env_w = s * jax.random.normal(ks[3], (ENV_RAW_CHANNELS, ENV_EMBED_CHANNELS), jnp.float32)
    env_b = jnp.zeros((ENV_EMBED_CHANNELS,), jnp.float32)
    # _initial_text_kernel_ll: hidden -> Cg * Ce.
    text_kernel_w = s * jax.random.normal(ks[4], (TEXT_HIDDEN, _TK_SIZE), jnp.float32)
    text_kernel_b = jnp.zeros((_TK_SIZE,), jnp.float32)
    # LingUNet stand-in: text-conditioned 1x1 conv producing ROTATIONS maps.
    lingunet_text_w = s * jax.random.normal(ks[5], (TEXT_HIDDEN, _LING_SIZE), jnp.float32)
    lingunet_text_b = jnp.zeros((_LING_SIZE,), jnp.float32)
    # Additional scalar output head (STOP logit).
    addpix_w = s * jax.random.normal(ks[6], (TEXT_HIDDEN, NUM_ADDITIONAL_PIXELS), jnp.float32)
    addpix_b = jnp.zeros((NUM_ADDITIONAL_PIXELS,), jnp.float32)

    # Fuse the three instruction heads into one lane-dense (32, 128) matmul.
    heads_w = jnp.concatenate([text_kernel_w, lingunet_text_w, addpix_w], axis=1)   # (32, 105)
    heads_b = jnp.concatenate([text_kernel_b, lingunet_text_b, addpix_b], axis=0)   # (105,)
    heads_w = jnp.pad(heads_w, ((0, 0), (0, _HEADS_PAD - _HEADS)))
    heads_b = jnp.pad(heads_b, (0, _HEADS_PAD - _HEADS)).reshape(1, _HEADS_PAD)

    return {
        "token_embedding": token_embedding,
        "rnn_wx": rnn_wx,
        "rnn_wh": rnn_wh,
        "rnn_b2d": rnn_b.reshape(1, TEXT_HIDDEN),
        "heads_w": heads_w,
        "heads_b": heads_b,
        # (Ce, Craw) layout so HW=256 stays on the lane axis inside the kernel.
        "env_w_t": env_w.T,
        "env_b2d": env_b.reshape(ENV_EMBED_CHANNELS, 1),
    }


# ------------------------------ forward --------------------------------------
def forward(params, tokens, seq_lens, env_raw):
    B, S = tokens.shape
    LIN, Ce, Craw = LINGUNET_IN_CHANNELS, ENV_EMBED_CHANNELS, ENV_RAW_CHANNELS
    # Token-embedding gather (plain XLA); time-major, flattened so the hoisted
    # RNN input projection is a single clean (S*B, E_tok) tile.
    emb = params["token_embedding"][tokens].astype(jnp.float32)           # (B, S, E)
    emb2d = jnp.transpose(emb, (1, 0, 2)).reshape(S * B, TOKEN_EMBED)     # row t*B + b
    seq_lens2d = seq_lens.reshape(B, 1).astype(jnp.int32)
    # NCHW keeps H*W contiguous: pure reshape, HW on lanes, examples stacked on rows.
    env_flat = env_raw.reshape(B * Craw, HW).astype(jnp.float32)

    # Block-diagonal environment 1x1-conv weight / bias with "gap" rows for the
    # grounding channels: the env dot directly produces the concat layout
    # [env_b(8) | grounding_b(4)] per example, with grounding rows = 0.
    envw_big = jnp.zeros((B * LIN, B * Craw), jnp.float32)
    envb_big = jnp.zeros((B * LIN, 1), jnp.float32)
    for b in range(B):
        envw_big = envw_big.at[b * LIN:b * LIN + Ce,
                               b * Craw:(b + 1) * Craw].set(params["env_w_t"])
        envb_big = envb_big.at[b * LIN:b * LIN + Ce, :].set(params["env_b2d"])

    voxel_flat, stop = fused_forward(params, emb2d, seq_lens2d,
                                     envw_big, envb_big, env_flat)
    voxel = voxel_flat.reshape(B, NUM_ROTATIONS, EDGE_WIDTH, EDGE_WIDTH)
    # TODO(synk): hex_util offset<->axial + translate/rotate transforms and the
    # Cerealbar_VIN backprop branch have no definitions here; identity / skipped.
    return VoxelPredictions(voxel, stop.reshape(B), None, True)


# -------------------------- pure-JAX reference -------------------------------
def reference_forward(params, tokens, seq_lens, env_raw):
    """Plain-jnp mirror of the same math (original concat formulation)."""
    B = tokens.shape[0]
    emb = params["token_embedding"][tokens].astype(jnp.float32)   # (B, S, E)
    h = jnp.zeros((B, TEXT_HIDDEN), jnp.float32)
    instr = jnp.zeros((B, TEXT_HIDDEN), jnp.float32)
    last_idx = seq_lens.reshape(B, 1) - 1
    for t in range(SEQ_LEN):
        h = jnp.tanh(emb[:, t, :] @ params["rnn_wx"] + h @ params["rnn_wh"]
                     + params["rnn_b2d"])
        instr = jnp.where(last_idx == t, h, instr)
    heads = instr @ params["heads_w"] + params["heads_b"]
    tkg = heads[:, :_TK_SIZE].reshape(B, GROUNDING_CHANNELS, ENV_EMBED_CHANNELS)
    tkl = heads[:, _TK_SIZE:_STOP_IDX].reshape(B, LINGUNET_OUT_CHANNELS, LINGUNET_IN_CHANNELS)
    stop_logit = heads[:, _STOP_IDX]
    env_flat = env_raw.reshape(B, ENV_RAW_CHANNELS, HW).astype(jnp.float32)
    env_emb = jnp.einsum("oc,bcp->bop", params["env_w_t"], env_flat) + params["env_b2d"][None]
    grounding = jnp.einsum("bgo,bop->bgp", tkg, env_emb)
    lingunet_in = jnp.concatenate([env_emb, grounding], axis=1)
    images = jnp.einsum("bri,bip->brp", tkl, lingunet_in)
    all_logits = jnp.concatenate([images.reshape(B, -1), stop_logit.reshape(B, 1)], axis=1)
    dist = jax.nn.softmax(all_logits, axis=-1)
    voxel = dist[:, :-1].reshape(B, NUM_ROTATIONS, EDGE_WIDTH, EDGE_WIDTH)
    return voxel, dist[:, -1]


# ---------------------------------- main --------------------------------------
if __name__ == "__main__":
    key = jax.random.PRNGKey(0)
    pkey, dkey = jax.random.split(key)
    params = init_params(pkey)

    k_tok, k_env = jax.random.split(dkey)
    tokens = jax.random.randint(k_tok, (BATCH, SEQ_LEN), 0, VOCAB, dtype=jnp.int32)
    seq_lens = jnp.array([SEQ_LEN, SEQ_LEN - 2], dtype=jnp.int32)
    env_raw = jax.random.normal(
        k_env, (BATCH, ENV_RAW_CHANNELS, EDGE_WIDTH, EDGE_WIDTH), dtype=jnp.float32)

    out = jax.jit(forward)(params, tokens, seq_lens, env_raw)
    out = jax.block_until_ready(out)

    assert out.voxel_probabilities.shape == (BATCH, NUM_ROTATIONS, EDGE_WIDTH, EDGE_WIDTH)
    assert out.stop_probabilities.shape == (BATCH,)
    total_mass = out.voxel_probabilities.reshape(BATCH, -1).sum(axis=1) + out.stop_probabilities
    assert jnp.allclose(total_mass, 1.0, atol=1e-4), total_mass

    ref_voxel, ref_stop = jax.jit(reference_forward)(params, tokens, seq_lens, env_raw)
    assert jnp.allclose(out.voxel_probabilities, ref_voxel, rtol=5e-2, atol=1e-5), "voxel mismatch"
    assert jnp.allclose(out.stop_probabilities, ref_stop, rtol=5e-2, atol=1e-5), "stop mismatch"

    print("KERNEL_OK")
</pallas_src>

<mosaic_0001>
module attributes {stable_mosaic.version = 11 : i64} {
  func.func @_fused_forward_kernel(%arg0: i32, %arg1: memref<16x16xf32, #tpu.memory_space<vmem>>, %arg2: memref<2x1xi32, #tpu.memory_space<vmem>>, %arg3: memref<16x32xf32, #tpu.memory_space<vmem>>, %arg4: memref<32x32xf32, #tpu.memory_space<vmem>>, %arg5: memref<1x32xf32, #tpu.memory_space<vmem>>, %arg6: memref<32x128xf32, #tpu.memory_space<vmem>>, %arg7: memref<1x128xf32, #tpu.memory_space<vmem>>, %arg8: memref<24x12xf32, #tpu.memory_space<vmem>>, %arg9: memref<24x1xf32, #tpu.memory_space<vmem>>, %arg10: memref<12x256xf32, #tpu.memory_space<vmem>>, %arg11: memref<12x256xf32, #tpu.memory_space<vmem>>, %arg12: memref<2x1xf32, #tpu.memory_space<vmem>>, %arg13: memref<8x24xf32, #tpu.memory_space<vmem>>, %arg14: memref<12x24xf32, #tpu.memory_space<vmem>>, %arg15: memref<24x256xf32, #tpu.memory_space<vmem>>) attributes {dimension_semantics = [#tpu.dimension_semantics<arbitrary>], iteration_bounds = array<i64: 1>, scalar_prefetch = 0 : i64, scratch_operands = 3 : i64, tpu.core_type = #tpu.core_type<tc>, window_params = [{pipeline_mode = #tpu.pipeline_mode<synchronous>, transform_indices = @transform_0, window_bounds = array<i64: 16, 16>}, {pipeline_mode = #tpu.pipeline_mode<synchronous>, transform_indices = @transform_1, window_bounds = array<i64: 2, 1>}, {pipeline_mode = #tpu.pipeline_mode<synchronous>, transform_indices = @transform_2, window_bounds = array<i64: 16, 32>}, {pipeline_mode = #tpu.pipeline_mode<synchronous>, transform_indices = @transform_3, window_bounds = array<i64: 32, 32>}, {pipeline_mode = #tpu.pipeline_mode<synchronous>, transform_indices = @transform_4, window_bounds = array<i64: 1, 32>}, {pipeline_mode = #tpu.pipeline_mode<synchronous>, transform_indices = @transform_5, window_bounds = array<i64: 32, 128>}, {pipeline_mode = #tpu.pipeline_mode<synchronous>, transform_indices = @transform_6, window_bounds = array<i64: 1, 128>}, {pipeline_mode = #tpu.pipeline_mode<synchronous>, transform_indices = @transform_7, window_bounds = array<i64: 24, 12>}, {pipeline_mode = #tpu.pipeline_mode<synchronous>, transform_indices = @transform_8, window_bounds = array<i64: 24, 1>}, {pipeline_mode = #tpu.pipeline_mode<synchronous>, transform_indices = @transform_9, window_bounds = array<i64: 12, 256>}, {pipeline_mode = #tpu.pipeline_mode<synchronous>, transform_indices = @transform_10, window_bounds = array<i64: 12, 256>}, {pipeline_mode = #tpu.pipeline_mode<synchronous>, transform_indices = @transform_11, window_bounds = array<i64: 2, 1>}]} {
    %c0 = arith.constant 0 : index
    %c0_0 = arith.constant 0 : index
    %0 = vector.load %arg1[%c0, %c0_0] : memref<16x16xf32, #tpu.memory_space<vmem>>, vector<16x16xf32>
    %c0_1 = arith.constant 0 : index
    %c0_2 = arith.constant 0 : index
    %1 = vector.load %arg3[%c0_1, %c0_2] : memref<16x32xf32, #tpu.memory_space<vmem>>, vector<16x32xf32>
    %cst = arith.constant dense<0.000000e+00> : vector<16x32xf32>
    %2 = tpu.matmul %0, %1, %cst {dimension_numbers = #tpu.dot_dimension_numbers<[1], [0], [0], [1], [0, 0, 1, 1], [], []>} : vector<16x16xf32>, vector<16x32xf32>, vector<16x32xf32> -> vector<16x32xf32>
    %c0_3 = arith.constant 0 : index
    %c0_4 = arith.constant 0 : index
    %3 = vector.load %arg5[%c0_3, %c0_4] : memref<1x32xf32, #tpu.memory_space<vmem>>, vector<1x32xf32>
    %4 = vector.broadcast %3 : vector<1x32xf32> to vector<16x32xf32>
    %5 = arith.addf %2, %4 : vector<16x32xf32>
    %c0_5 = arith.constant 0 : index
    %c0_6 = arith.constant 0 : index
    %6 = vector.load %arg4[%c0_5, %c0_6] : memref<32x32xf32, #tpu.memory_space<vmem>>, vector<32x32xf32>
    %c0_7 = arith.constant 0 : index
    %c0_8 = arith.constant 0 : index
    %7 = vector.load %arg2[%c0_7, %c0_8] : memref<2x1xi32, #tpu.memory_space<vmem>>, vector<2x1xi32>
    %c1_i32 = arith.constant 1 : i32
    %8 = vector.broadcast %c1_i32 : i32 to vector<2x1xi32>
    %9 = arith.subi %7, %8 : vector<2x1xi32>
    %cst_9 = arith.constant 0.000000e+00 : f32
    %10 = vector.broadcast %cst_9 : f32 to vector<2x32xf32>
    %cst_10 = arith.constant 0.000000e+00 : f32
    %11 = vector.broadcast %cst_10 : f32 to vector<2x32xf32>
    %12 = vector.extract_strided_slice %5 {offsets = [0, 0], sizes = [2, 32], strides = [1, 1]} : vector<16x32xf32> to vector<2x32xf32>
    %cst_11 = arith.constant dense<0.000000e+00> : vector<2x32xf32>
    %13 = tpu.matmul %10, %6, %cst_11 {dimension_numbers = #tpu.dot_dimension_numbers<[1], [0], [0], [1], [0, 0, 1, 1], [], []>} : vector<2x32xf32>, vector<32x32xf32>, vector<2x32xf32> -> vector<2x32xf32>
    %14 = arith.addf %12, %13 : vector<2x32xf32>
    %15 = math.tanh %14 : vector<2x32xf32>
    %c0_i32 = arith.constant 0 : i32
    %16 = vector.broadcast %c0_i32 : i32 to vector<2x1xi32>
    %17 = arith.cmpi eq, %9, %16 : vector<2x1xi32>
    %18 = vector.shape_cast %17 : vector<2x1xi1> to vector<2x1xi1>
    %19 = vector.broadcast %18 : vector<2x1xi1> to vector<2x32xi1>
    %20 = arith.select %19, %15, %11 : vector<2x32xi1>, vector<2x32xf32>
    %21 = vector.extract_strided_slice %5 {offsets = [2, 0], sizes = [2, 32], strides = [1, 1]} : vector<16x32xf32> to vector<2x32xf32>
    %cst_12 = arith.constant dense<0.000000e+00> : vector<2x32xf32>
    %22 = tpu.matmul %15, %6, %cst_12 {dimension_numbers = #tpu.dot_dimension_numbers<[1], [0], [0], [1], [0, 0, 1, 1], [], []>} : vector<2x32xf32>, vector<32x32xf32>, vector<2x32xf32> -> vector<2x32xf32>
    %23 = arith.addf %21, %22 : vector<2x32xf32>
    %24 = math.tanh %23 : vector<2x32xf32>
    %c1_i32_13 = arith.constant 1 : i32
    %25 = vector.broadcast %c1_i32_13 : i32 to vector<2x1xi32>
    %26 = arith.cmpi eq, %9, %25 : vector<2x1xi32>
    %27 = vector.shape_cast %26 : vector<2x1xi1> to vector<2x1xi1>
    %28 = vector.broadcast %27 : vector<2x1xi1> to vector<2x32xi1>
    %29 = arith.select %28, %24, %20 : vector<2x32xi1>, vector<2x32xf32>
    %30 = vector.extract_strided_slice %5 {offsets = [4, 0], sizes = [2, 32], strides = [1, 1]} : vector<16x32xf32> to vector<2x32xf32>
    %cst_14 = arith.constant dense<0.000000e+00> : vector<2x32xf32>
    %31 = tpu.matmul %24, %6, %cst_14 {dimension_numbers = #tpu.dot_dimension_numbers<[1], [0], [0], [1], [0, 0, 1, 1], [], []>} : vector<2x32xf32>, vector<32x32xf32>, vector<2x32xf32> -> vector<2x32xf32>
    %32 = arith.addf %30, %31 : vector<2x32xf32>
    %33 = math.tanh %32 : vector<2x32xf32>
    %c2_i32 = arith.constant 2 : i32
    %34 = vector.broadcast %c2_i32 : i32 to vector<2x1xi32>
    %35 = arith.cmpi eq, %9, %34 : vector<2x1xi32>
    %36 = vector.shape_cast %35 : vector<2x1xi1> to vector<2x1xi1>
    %37 = vector.broadcast %36 : vector<2x1xi1> to vector<2x32xi1>
    %38 = arith.select %37, %33, %29 : vector<2x32xi1>, vector<2x32xf32>
    %39 = vector.extract_strided_slice %5 {offsets = [6, 0], sizes = [2, 32], strides = [1, 1]} : vector<16x32xf32> to vector<2x32xf32>
    %cst_15 = arith.constant dense<0.000000e+00> : vector<2x32xf32>
    %40 = tpu.matmul %33, %6, %cst_15 {dimension_numbers = #tpu.dot_dimension_numbers<[1], [0], [0], [1], [0, 0, 1, 1], [], []>} : vector<2x32xf32>, vector<32x32xf32>, vector<2x32xf32> -> vector<2x32xf32>
    %41 = arith.addf %39, %40 : vector<2x32xf32>
    %42 = math.tanh %41 : vector<2x32xf32>
    %c3_i32 = arith.constant 3 : i32
    %43 = vector.broadcast %c3_i32 : i32 to vector<2x1xi32>
    %44 = arith.cmpi eq, %9, %43 : vector<2x1xi32>
    %45 = vector.shape_cast %44 : vector<2x1xi1> to vector<2x1xi1>
    %46 = vector.broadcast %45 : vector<2x1xi1> to vector<2x32xi1>
    %47 = arith.select %46, %42, %38 : vector<2x32xi1>, vector<2x32xf32>
    %48 = vector.extract_strided_slice %5 {offsets = [8, 0], sizes = [2, 32], strides = [1, 1]} : vector<16x32xf32> to vector<2x32xf32>
    %cst_16 = arith.constant dense<0.000000e+00> : vector<2x32xf32>
    %49 = tpu.matmul %42, %6, %cst_16 {dimension_numbers = #tpu.dot_dimension_numbers<[1], [0], [0], [1], [0, 0, 1, 1], [], []>} : vector<2x32xf32>, vector<32x32xf32>, vector<2x32xf32> -> vector<2x32xf32>
    %50 = arith.addf %48, %49 : vector<2x32xf32>
    %51 = math.tanh %50 : vector<2x32xf32>
    %c4_i32 = arith.constant 4 : i32
    %52 = vector.broadcast %c4_i32 : i32 to vector<2x1xi32>
    %53 = arith.cmpi eq, %9, %52 : vector<2x1xi32>
    %54 = vector.shape_cast %53 : vector<2x1xi1> to vector<2x1xi1>
    %55 = vector.broadcast %54 : vector<2x1xi1> to vector<2x32xi1>
    %56 = arith.select %55, %51, %47 : vector<2x32xi1>, vector<2x32xf32>
    %57 = vector.extract_strided_slice %5 {offsets = [10, 0], sizes = [2, 32], strides = [1, 1]} : vector<16x32xf32> to vector<2x32xf32>
    %cst_17 = arith.constant dense<0.000000e+00> : vector<2x32xf32>
    %58 = tpu.matmul %51, %6, %cst_17 {dimension_numbers = #tpu.dot_dimension_numbers<[1], [0], [0], [1], [0, 0, 1, 1], [], []>} : vector<2x32xf32>, vector<32x32xf32>, vector<2x32xf32> -> vector<2x32xf32>
    %59 = arith.addf %57, %58 : vector<2x32xf32>
    %60 = math.tanh %59 : vector<2x32xf32>
    %c5_i32 = arith.constant 5 : i32
    %61 = vector.broadcast %c5_i32 : i32 to vector<2x1xi32>
    %62 = arith.cmpi eq, %9, %61 : vector<2x1xi32>
    %63 = vector.shape_cast %62 : vector<2x1xi1> to vector<2x1xi1>
    %64 = vector.broadcast %63 : vector<2x1xi1> to vector<2x32xi1>
    %65 = arith.select %64, %60, %56 : vector<2x32xi1>, vector<2x32xf32>
    %66 = vector.extract_strided_slice %5 {offsets = [12, 0], sizes = [2, 32], strides = [1, 1]} : vector<16x32xf32> to vector<2x32xf32>
    %cst_18 = arith.constant dense<0.000000e+00> : vector<2x32xf32>
    %67 = tpu.matmul %60, %6, %cst_18 {dimension_numbers = #tpu.dot_dimension_numbers<[1], [0], [0], [1], [0, 0, 1, 1], [], []>} : vector<2x32xf32>, vector<32x32xf32>, vector<2x32xf32> -> vector<2x32xf32>
    %68 = arith.addf %66, %67 : vector<2x32xf32>
    %69 = math.tanh %68 : vector<2x32xf32>
    %c6_i32 = arith.constant 6 : i32
    %70 = vector.broadcast %c6_i32 : i32 to vector<2x1xi32>
    %71 = arith.cmpi eq, %9, %70 : vector<2x1xi32>
    %72 = vector.shape_cast %71 : vector<2x1xi1> to vector<2x1xi1>
    %73 = vector.broadcast %72 : vector<2x1xi1> to vector<2x32xi1>
    %74 = arith.select %73, %69, %65 : vector<2x32xi1>, vector<2x32xf32>
    %75 = vector.extract_strided_slice %5 {offsets = [14, 0], sizes = [2, 32], strides = [1, 1]} : vector<16x32xf32> to vector<2x32xf32>
    %cst_19 = arith.constant dense<0.000000e+00> : vector<2x32xf32>
    %76 = tpu.matmul %69, %6, %cst_19 {dimension_numbers = #tpu.dot_dimension_numbers<[1], [0], [0], [1], [0, 0, 1, 1], [], []>} : vector<2x32xf32>, vector<32x32xf32>, vector<2x32xf32> -> vector<2x32xf32>
    %77 = arith.addf %75, %76 : vector<2x32xf32>
    %78 = math.tanh %77 : vector<2x32xf32>
    %c7_i32 = arith.constant 7 : i32
    %79 = vector.broadcast %c7_i32 : i32 to vector<2x1xi32>
    %80 = arith.cmpi eq, %9, %79 : vector<2x1xi32>
    %81 = vector.shape_cast %80 : vector<2x1xi1> to vector<2x1xi1>
    %82 = vector.broadcast %81 : vector<2x1xi1> to vector<2x32xi1>
    %83 = arith.select %82, %78, %74 : vector<2x32xi1>, vector<2x32xf32>
    %c0_20 = arith.constant 0 : index
    %c0_21 = arith.constant 0 : index
    %84 = vector.load %arg6[%c0_20, %c0_21] : memref<32x128xf32, #tpu.memory_space<vmem>>, vector<32x128xf32>
    %cst_22 = arith.constant dense<0.000000e+00> : vector<2x128xf32>
    %85 = tpu.matmul %83, %84, %cst_22 {dimension_numbers = #tpu.dot_dimension_numbers<[1], [0], [0], [1], [0, 0, 1, 1], [], []>} : vector<2x32xf32>, vector<32x128xf32>, vector<2x128xf32> -> vector<2x128xf32>
    %c0_23 = arith.constant 0 : index
    %c0_24 = arith.constant 0 : index
    %86 = vector.load %arg7[%c0_23, %c0_24] : memref<1x128xf32, #tpu.memory_space<vmem>>, vector<1x128xf32>
    %87 = vector.broadcast %86 : vector<1x128xf32> to vector<2x128xf32>
    %88 = arith.addf %85, %87 : vector<2x128xf32>
    %cst_25 = arith.constant 0.000000e+00 : f32
    %89 = vector.broadcast %cst_25 : f32 to vector<8x24xf32>
    %c0_26 = arith.constant 0 : index
    %c0_27 = arith.constant 0 : index
    %90 = vector.load %arg13[%c0_26, %c0_27] : memref<8x24xf32, #tpu.memory_space<vmem>>, vector<8x24xf32>
    tpu.vector_store %arg13[%c0_26, %c0_27], %89 {strides = array<i32>} : memref<8x24xf32, #tpu.memory_space<vmem>>, vector<8x24xf32>,
    %cst_28 = arith.constant 0.000000e+00 : f32
    %91 = vector.broadcast %cst_28 : f32 to vector<12x24xf32>
    %c0_29 = arith.constant 0 : index
    %c0_30 = arith.constant 0 : index
    %92 = vector.load %arg14[%c0_29, %c0_30] : memref<12x24xf32, #tpu.memory_space<vmem>>, vector<12x24xf32>
    tpu.vector_store %arg14[%c0_29, %c0_30], %91 {strides = array<i32>} : memref<12x24xf32, #tpu.memory_space<vmem>>, vector<12x24xf32>,
    %93 = vector.extract_strided_slice %88 {offsets = [0, 0], sizes = [1, 128], strides = [1, 1]} : vector<2x128xf32> to vector<1x128xf32>
    %94 = vector.extract_strided_slice %93 {offsets = [0, 0], sizes = [1, 8], strides = [1, 1]} : vector<1x128xf32> to vector<1x8xf32>
    %c0_31 = arith.constant 0 : index
    %c0_32 = arith.constant 0 : index
    %95 = vector.load %arg13[%c0_31, %c0_32] : memref<8x24xf32, #tpu.memory_space<vmem>>, vector<1x8xf32>
    tpu.vector_store %arg13[%c0_31, %c0_32], %94 {strides = array<i32>} : memref<8x24xf32, #tpu.memory_space<vmem>>, vector<1x8xf32>,
    %96 = vector.extract_strided_slice %93 {offsets = [0, 8], sizes = [1, 8], strides = [1, 1]} : vector<1x128xf32> to vector<1x8xf32>
    %c1 = arith.constant 1 : index
    %c0_33 = arith.constant 0 : index
    %97 = vector.load %arg13[%c1, %c0_33] : memref<8x24xf32, #tpu.memory_space<vmem>>, vector<1x8xf32>
    tpu.vector_store %arg13[%c1, %c0_33], %96 {strides = array<i32>} : memref<8x24xf32, #tpu.memory_space<vmem>>, vector<1x8xf32>,
    %98 = vector.extract_strided_slice %93 {offsets = [0, 16], sizes = [1, 8], strides = [1, 1]} : vector<1x128xf32> to vector<1x8xf32>
    %c2 = arith.constant 2 : index
    %c0_34 = arith.constant 0 : index
    %99 = vector.load %arg13[%c2, %c0_34] : memref<8x24xf32, #tpu.memory_space<vmem>>, vector<1x8xf32>
    tpu.vector_store %arg13[%c2, %c0_34], %98 {strides = array<i32>} : memref<8x24xf32, #tpu.memory_space<vmem>>, vector<1x8xf32>,
    %100 = vector.extract_strided_slice %93 {offsets = [0, 24], sizes = [1, 8], strides = [1, 1]} : vector<1x128xf32> to vector<1x8xf32>
    %c3 = arith.constant 3 : index
    %c0_35 = arith.constant 0 : index
    %101 = vector.load %arg13[%c3, %c0_35] : memref<8x24xf32, #tpu.memory_space<vmem>>, vector<1x8xf32>
    tpu.vector_store %arg13[%c3, %c0_35], %100 {strides = array<i32>} : memref<8x24xf32, #tpu.memory_space<vmem>>, vector<1x8xf32>,
    %102 = vector.extract_strided_slice %93 {offsets = [0, 32], sizes = [1, 12], strides = [1, 1]} : vector<1x128xf32> to vector<1x12xf32>
    %c0_36 = arith.constant 0 : index
    %c0_37 = arith.constant 0 : index
    %103 = vector.load %arg14[%c0_36, %c0_37] : memref<12x24xf32, #tpu.memory_space<vmem>>, vector<1x12xf32>
    tpu.vector_store %arg14[%c0_36, %c0_37], %102 {strides = array<i32>} : memref<12x24xf32, #tpu.memory_space<vmem>>, vector<1x12xf32>,
    %104 = vector.extract_strided_slice %93 {offsets = [0, 44], sizes = [1, 12], strides = [1, 1]} : vector<1x128xf32> to vector<1x12xf32>
    %c1_38 = arith.constant 1 : index
    %c0_39 = arith.constant 0 : index
    %105 = vector.load %arg14[%c1_38, %c0_39] : memref<12x24xf32, #tpu.memory_space<vmem>>, vector<1x12xf32>
    tpu.vector_store %arg14[%c1_38, %c0_39], %104 {strides = array<i32>} : memref<12x24xf32, #tpu.memory_space<vmem>>, vector<1x12xf32>,
    %106 = vector.extract_strided_slice %93 {offsets = [0, 56], sizes = [1, 12], strides = [1, 1]} : vector<1x128xf32> to vector<1x12xf32>
    %c2_40 = arith.constant 2 : index
    %c0_41 = arith.constant 0 : index
    %107 = vector.load %arg14[%c2_40, %c0_41] : memref<12x24xf32, #tpu.memory_space<vmem>>, vector<1x12xf32>
    tpu.vector_store %arg14[%c2_40, %c0_41], %106 {strides = array<i32>} : memref<12x24xf32, #tpu.memory_space<vmem>>, vector<1x12xf32>,
    %108 = vector.extract_strided_slice %93 {offsets = [0, 68], sizes = [1, 12], strides = [1, 1]} : vector<1x128xf32> to vector<1x12xf32>
    %c3_42 = arith.constant 3 : index
    %c0_43 = arith.constant 0 : index
    %109 = vector.load %arg14[%c3_42, %c0_43] : memref<12x24xf32, #tpu.memory_space<vmem>>, vector<1x12xf32>
    tpu.vector_store %arg14[%c3_42, %c0_43], %108 {strides = array<i32>} : memref<12x24xf32, #tpu.memory_space<vmem>>, vector<1x12xf32>,
    %110 = vector.extract_strided_slice %93 {offsets = [0, 80], sizes = [1, 12], strides = [1, 1]} : vector<1x128xf32> to vector<1x12xf32>
    %c4 = arith.constant 4 : index
    %c0_44 = arith.constant 0 : index
    %111 = vector.load %arg14[%c4, %c0_44] : memref<12x24xf32, #tpu.memory_space<vmem>>, vector<1x12xf32>
    tpu.vector_store %arg14[%c4, %c0_44], %110 {strides = array<i32>} : memref<12x24xf32, #tpu.memory_space<vmem>>, vector<1x12xf32>,
    %112 = vector.extract_strided_slice %93 {offsets = [0, 92], sizes = [1, 12], strides = [1, 1]} : vector<1x128xf32> to vector<1x12xf32>
    %c5 = arith.constant 5 : index
    %c0_45 = arith.constant 0 : index
    %113 = vector.load %arg14[%c5, %c0_45] : memref<12x24xf32, #tpu.memory_space<vmem>>, vector<1x12xf32>
    tpu.vector_store %arg14[%c5, %c0_45], %112 {strides = array<i32>} : memref<12x24xf32, #tpu.memory_space<vmem>>, vector<1x12xf32>,
    %114 = vector.extract_strided_slice %88 {offsets = [1, 0], sizes = [1, 128], strides = [1, 1]} : vector<2x128xf32> to vector<1x128xf32>
    %115 = vector.extract_strided_slice %114 {offsets = [0, 0], sizes = [1, 8], strides = [1, 1]} : vector<1x128xf32> to vector<1x8xf32>
    %c4_46 = arith.constant 4 : index
    %c12 = arith.constant 12 : index
    %116 = vector.load %arg13[%c4_46, %c12] : memref<8x24xf32, #tpu.memory_space<vmem>>, vector<1x8xf32>
    tpu.vector_store %arg13[%c4_46, %c12], %115 {strides = array<i32>} : memref<8x24xf32, #tpu.memory_space<vmem>>, vector<1x8xf32>,
    %117 = vector.extract_strided_slice %114 {offsets = [0, 8], sizes = [1, 8], strides = [1, 1]} : vector<1x128xf32> to vector<1x8xf32>
    %c5_47 = arith.constant 5 : index
    %c12_48 = arith.constant 12 : index
    %118 = vector.load %arg13[%c5_47, %c12_48] : memref<8x24xf32, #tpu.memory_space<vmem>>, vector<1x8xf32>
    tpu.vector_store %arg13[%c5_47, %c12_48], %117 {strides = array<i32>} : memref<8x24xf32, #tpu.memory_space<vmem>>, vector<1x8xf32>,
    %119 = vector.extract_strided_slice %114 {offsets = [0, 16], sizes = [1, 8], strides = [1, 1]} : vector<1x128xf32> to vector<1x8xf32>
    %c6 = arith.constant 6 : index
    %c12_49 = arith.constant 12 : index
    %120 = vector.load %arg13[%c6, %c12_49] : memref<8x24xf32, #tpu.memory_space<vmem>>, vector<1x8xf32>
    tpu.vector_store %arg13[%c6, %c12_49], %119 {strides = array<i32>} : memref<8x24xf32, #tpu.memory_space<vmem>>, vector<1x8xf32>,
    %121 = vector.extract_strided_slice %114 {offsets = [0, 24], sizes = [1, 8], strides = [1, 1]} : vector<1x128xf32> to vector<1x8xf32>
    %c7 = arith.constant 7 : index
    %c12_50 = arith.constant 12 : index
    %122 = vector.load %arg13[%c7, %c12_50] : memref<8x24xf32, #tpu.memory_space<vmem>>, vector<1x8xf32>
    tpu.vector_store %arg13[%c7, %c12_50], %121 {strides = array<i32>} : memref<8x24xf32, #tpu.memory_space<vmem>>, vector<1x8xf32>,
    %123 = vector.extract_strided_slice %114 {offsets = [0, 32], sizes = [1, 12], strides = [1, 1]} : vector<1x128xf32> to vector<1x12xf32>
    %c6_51 = arith.constant 6 : index
    %c12_52 = arith.constant 12 : index
    %124 = vector.load %arg14[%c6_51, %c12_52] : memref<12x24xf32, #tpu.memory_space<vmem>>, vector<1x12xf32>
    tpu.vector_store %arg14[%c6_51, %c12_52], %123 {strides = array<i32>} : memref<12x24xf32, #tpu.memory_space<vmem>>, vector<1x12xf32>,
    %125 = vector.extract_strided_slice %114 {offsets = [0, 44], sizes = [1, 12], strides = [1, 1]} : vector<1x128xf32> to vector<1x12xf32>
    %c7_53 = arith.constant 7 : index
    %c12_54 = arith.constant 12 : index
    %126 = vector.load %arg14[%c7_53, %c12_54] : memref<12x24xf32, #tpu.memory_space<vmem>>, vector<1x12xf32>
    tpu.vector_store %arg14[%c7_53, %c12_54], %125 {strides = array<i32>} : memref<12x24xf32, #tpu.memory_space<vmem>>, vector<1x12xf32>,
    %127 = vector.extract_strided_slice %114 {offsets = [0, 56], sizes = [1, 12], strides = [1, 1]} : vector<1x128xf32> to vector<1x12xf32>
    %c8 = arith.constant 8 : index
    %c12_55 = arith.constant 12 : index
    %128 = vector.load %arg14[%c8, %c12_55] : memref<12x24xf32, #tpu.memory_space<vmem>>, vector<1x12xf32>
    tpu.vector_store %arg14[%c8, %c12_55], %127 {strides = array<i32>} : memref<12x24xf32, #tpu.memory_space<vmem>>, vector<1x12xf32>,
    %129 = vector.extract_strided_slice %114 {offsets = [0, 68], sizes = [1, 12], strides = [1, 1]} : vector<1x128xf32> to vector<1x12xf32>
    %c9 = arith.constant 9 : index
    %c12_56 = arith.constant 12 : index
    %130 = vector.load %arg14[%c9, %c12_56] : memref<12x24xf32, #tpu.memory_space<vmem>>, vector<1x12xf32>
    tpu.vector_store %arg14[%c9, %c12_56], %129 {strides = array<i32>} : memref<12x24xf32, #tpu.memory_space<vmem>>, vector<1x12xf32>,
    %131 = vector.extract_strided_slice %114 {offsets = [0, 80], sizes = [1, 12], strides = [1, 1]} : vector<1x128xf32> to vector<1x12xf32>
    %c10 = arith.constant 10 : index
    %c12_57 = arith.constant 12 : index
    %132 = vector.load %arg14[%c10, %c12_57] : memref<12x24xf32, #tpu.memory_space<vmem>>, vector<1x12xf32>
    tpu.vector_store %arg14[%c10, %c12_57], %131 {strides = array<i32>} : memref<12x24xf32, #tpu.memory_space<vmem>>, vector<1x12xf32>,
    %133 = vector.extract_strided_slice %114 {offsets = [0, 92], sizes = [1, 12], strides = [1, 1]} : vector<1x128xf32> to vector<1x12xf32>
    %c11 = arith.constant 11 : index
    %c12_58 = arith.constant 12 : index
    %134 = vector.load %arg14[%c11, %c12_58] : memref<12x24xf32, #tpu.memory_space<vmem>>, vector<1x12xf32>
    tpu.vector_store %arg14[%c11, %c12_58], %133 {strides = array<i32>} : memref<12x24xf32, #tpu.memory_space<vmem>>, vector<1x12xf32>,
    %c0_59 = arith.constant 0 : index
    %c0_60 = arith.constant 0 : index
    %135 = vector.load %arg8[%c0_59, %c0_60] : memref<24x12xf32, #tpu.memory_space<vmem>>, vector<24x12xf32>
    %c0_61 = arith.constant 0 : index
    %c0_62 = arith.constant 0 : index
    %136 = vector.load %arg10[%c0_61, %c0_62] : memref<12x256xf32, #tpu.memory_space<vmem>>, vector<12x256xf32>
    %cst_63 = arith.constant dense<0.000000e+00> : vector<24x256xf32>
    %137 = tpu.matmul %135, %136, %cst_63 {dimension_numbers = #tpu.dot_dimension_numbers<[1], [0], [0], [1], [0, 0, 1, 1], [], []>} : vector<24x12xf32>, vector<12x256xf32>, vector<24x256xf32> -> vector<24x256xf32>
    %c0_64 = arith.constant 0 : index
    %c0_65 = arith.constant 0 : index
    %138 = vector.load %arg9[%c0_64, %c0_65] : memref<24x1xf32, #tpu.memory_space<vmem>>, vector<24x1xf32>
    %139 = vector.broadcast %138 : vector<24x1xf32> to vector<24x256xf32>
    %140 = arith.addf %137, %139 : vector<24x256xf32>
    %c0_66 = arith.constant 0 : index
    %c0_67 = arith.constant 0 : index
    %141 = vector.load %arg15[%c0_66, %c0_67] : memref<24x256xf32, #tpu.memory_space<vmem>>, vector<24x256xf32>
    tpu.vector_store %arg15[%c0_66, %c0_67], %140 {strides = array<i32>} : memref<24x256xf32, #tpu.memory_space<vmem>>, vector<24x256xf32>,
    %c0_68 = arith.constant 0 : index
    %c0_69 = arith.constant 0 : index
    %142 = vector.load %arg13[%c0_68, %c0_69] : memref<8x24xf32, #tpu.memory_space<vmem>>, vector<8x24xf32>
    %c0_70 = arith.constant 0 : index
    %c0_71 = arith.constant 0 : index
    %143 = vector.load %arg15[%c0_70, %c0_71] : memref<24x256xf32, #tpu.memory_space<vmem>>, vector<24x256xf32>
    %cst_72 = arith.constant dense<0.000000e+00> : vector<8x256xf32>
    %144 = tpu.matmul %142, %143, %cst_72 {dimension_numbers = #tpu.dot_dimension_numbers<[1], [0], [0], [1], [0, 0, 1, 1], [], []>} : vector<8x24xf32>, vector<24x256xf32>, vector<8x256xf32> -> vector<8x256xf32>
    %145 = vector.extract_strided_slice %144 {offsets = [0, 0], sizes = [4, 256], strides = [1, 1]} : vector<8x256xf32> to vector<4x256xf32>
    %c8_73 = arith.constant 8 : index
    %c0_74 = arith.constant 0 : index
    %146 = vector.load %arg15[%c8_73, %c0_74] : memref<24x256xf32, #tpu.memory_space<vmem>>, vector<4x256xf32>
    tpu.vector_store %arg15[%c8_73, %c0_74], %145 {strides = array<i32>} : memref<24x256xf32, #tpu.memory_space<vmem>>, vector<4x256xf32>,
    %147 = vector.extract_strided_slice %144 {offsets = [4, 0], sizes = [4, 256], strides = [1, 1]} : vector<8x256xf32> to vector<4x256xf32>
    %c20 = arith.constant 20 : index
    %c0_75 = arith.constant 0 : index
    %148 = vector.load %arg15[%c20, %c0_75] : memref<24x256xf32, #tpu.memory_space<vmem>>, vector<4x256xf32>
    tpu.vector_store %arg15[%c20, %c0_75], %147 {strides = array<i32>} : memref<24x256xf32, #tpu.memory_space<vmem>>, vector<4x256xf32>,
    %c0_76 = arith.constant 0 : index
    %c0_77 = arith.constant 0 : index
    %149 = vector.load %arg14[%c0_76, %c0_77] : memref<12x24xf32, #tpu.memory_space<vmem>>, vector<12x24xf32>
    %c0_78 = arith.constant 0 : index
    %c0_79 = arith.constant 0 : index
    %150 = vector.load %arg15[%c0_78, %c0_79] : memref<24x256xf32, #tpu.memory_space<vmem>>, vector<24x256xf32>
    %cst_80 = arith.constant dense<0.000000e+00> : vector<12x256xf32>
    %151 = tpu.matmul %149, %150, %cst_80 {dimension_numbers = #tpu.dot_dimension_numbers<[1], [0], [0], [1], [0, 0, 1, 1], [], []>} : vector<12x24xf32>, vector<24x256xf32>, vector<12x256xf32> -> vector<12x256xf32>
    %152 = vector.extract_strided_slice %88 {offsets = [0, 104], sizes = [2, 1], strides = [1, 1]} : vector<2x128xf32> to vector<2x1xf32>
    %153 = vector.shape_cast %151 : vector<12x256xf32> to vector<1x12x256xf32>
    %cst_81 = arith.constant dense<0xFF800000> : vector<1xf32>
    %154 = vector.multi_reduction <maximumf>, %153, %cst_81 [1, 2] : vector<1x12x256xf32> to vector<1xf32>
    %155 = vector.shape_cast %154 : vector<1xf32> to vector<1x1x1xf32>
    %156 = vector.extract %155[0, 0, 0] : f32 from vector<1x1x1xf32>
    %157 = vector.shape_cast %152 : vector<2x1xf32> to vector<1x2x1xf32>
    %cst_82 = arith.constant dense<0xFF800000> : vector<1xf32>
    %158 = vector.multi_reduction <maximumf>, %157, %cst_82 [1, 2] : vector<1x2x1xf32> to vector<1xf32>
    %159 = vector.shape_cast %158 : vector<1xf32> to vector<1x1x1xf32>
    %160 = vector.extract %159[0, 0, 0] : f32 from vector<1x1x1xf32>
    %161 = arith.maximumf %156, %160 : f32
    %162 = vector.broadcast %161 : f32 to vector<12x256xf32>
    %163 = arith.subf %151, %162 : vector<12x256xf32>
    %164 = math.exp %163 : vector<12x256xf32>
    %165 = vector.broadcast %161 : f32 to vector<2x1xf32>
    %166 = arith.subf %152, %165 : vector<2x1xf32>
    %167 = math.exp %166 : vector<2x1xf32>
    %cst_83 = arith.constant dense<0.000000e+00> : vector<12xf32>
    %168 = vector.multi_reduction <add>, %164, %cst_83 [1] : vector<12x256xf32> to vector<12xf32>
    %169 = vector.shape_cast %168 : vector<12xf32> to vector<12x1xf32>
    %170 = tpu.iota {dimensions = array<i32: 0>} : vector<12x1xi32>
    %171 = tpu.iota {dimensions = array<i32: 0>} : vector<2x1xi32>
    %cst_84 = arith.constant 0.000000e+00 : f32
    %172 = vector.broadcast %cst_84 : f32 to vector<12x1xf32>
    %cst_85 = arith.constant 0.000000e+00 : f32
    %173 = vector.broadcast %cst_85 : f32 to vector<2x1xf32>
    %c0_i32_86 = arith.constant 0 : i32
    %174 = vector.broadcast %c0_i32_86 : i32 to vector<12x1xi32>
    %175 = arith.cmpi sge, %170, %174 : vector<12x1xi32>
    %c6_i32_87 = arith.constant 6 : i32
    %176 = vector.broadcast %c6_i32_87 : i32 to vector<12x1xi32>
    %177 = arith.cmpi slt, %170, %176 : vector<12x1xi32>
    %178 = arith.andi %175, %177 : vector<12x1xi1>
    %cst_88 = arith.constant 0.000000e+00 : f32
    %179 = vector.broadcast %cst_88 : f32 to vector<12x1xf32>
    %180 = arith.select %178, %169, %179 : vector<12x1xi1>, vector<12x1xf32>
    %181 = vector.shape_cast %180 : vector<12x1xf32> to vector<1x12x1xf32>
    %cst_89 = arith.constant dense<0.000000e+00> : vector<1xf32>
    %182 = vector.multi_reduction <add>, %181, %cst_89 [1, 2] : vector<1x12x1xf32> to vector<1xf32>
    %183 = vector.shape_cast %182 : vector<1xf32> to vector<1x1x1xf32>
    %184 = vector.extract %183[0, 0, 0] : f32 from vector<1x1x1xf32>
    %185 = vector.extract_strided_slice %167 {offsets = [0, 0], sizes = [1, 1], strides = [1, 1]} : vector<2x1xf32> to vector<1x1xf32>
    %186 = vector.broadcast %184 : f32 to vector<1x1xf32>
    %187 = arith.addf %186, %185 : vector<1x1xf32>
    %cst_90 = arith.constant 1.000000e+00 : f32
    %188 = vector.broadcast %cst_90 : f32 to vector<1x1xf32>
    %189 = arith.divf %188, %187 : vector<1x1xf32>
    %190 = vector.shape_cast %189 : vector<1x1xf32> to vector<1x1xf32>
    %191 = vector.broadcast %190 : vector<1x1xf32> to vector<12x1xf32>
    %192 = arith.select %178, %191, %172 : vector<12x1xi1>, vector<12x1xf32>
    %c0_i32_91 = arith.constant 0 : i32
    %193 = vector.broadcast %c0_i32_91 : i32 to vector<2x1xi32>
    %194 = arith.cmpi eq, %171, %193 : vector<2x1xi32>
    %195 = vector.shape_cast %189 : vector<1x1xf32> to vector<1x1xf32>
    %196 = vector.broadcast %195 : vector<1x1xf32> to vector<2x1xf32>
    %197 = arith.select %194, %196, %173 : vector<2x1xi1>, vector<2x1xf32>
    %c6_i32_92 = arith.constant 6 : i32
    %198 = vector.broadcast %c6_i32_92 : i32 to vector<12x1xi32>
    %199 = arith.cmpi sge, %170, %198 : vector<12x1xi32>
    %c12_i32 = arith.constant 12 : i32
    %200 = vector.broadcast %c12_i32 : i32 to vector<12x1xi32>
    %201 = arith.cmpi slt, %170, %200 : vector<12x1xi32>
    %202 = arith.andi %199, %201 : vector<12x1xi1>
    %cst_93 = arith.constant 0.000000e+00 : f32
    %203 = vector.broadcast %cst_93 : f32 to vector<12x1xf32>
    %204 = arith.select %202, %169, %203 : vector<12x1xi1>, vector<12x1xf32>
    %205 = vector.shape_cast %204 : vector<12x1xf32> to vector<1x12x1xf32>
    %cst_94 = arith.constant dense<0.000000e+00> : vector<1xf32>
    %206 = vector.multi_reduction <add>, %205, %cst_94 [1, 2] : vector<1x12x1xf32> to vector<1xf32>
    %207 = vector.shape_cast %206 : vector<1xf32> to vector<1x1x1xf32>
    %208 = vector.extract %207[0, 0, 0] : f32 from vector<1x1x1xf32>
    %209 = vector.extract_strided_slice %167 {offsets = [1, 0], sizes = [1, 1], strides = [1, 1]} : vector<2x1xf32> to vector<1x1xf32>
    %210 = vector.broadcast %208 : f32 to vector<1x1xf32>
    %211 = arith.addf %210, %209 : vector<1x1xf32>
    %cst_95 = arith.constant 1.000000e+00 : f32
    %212 = vector.broadcast %cst_95 : f32 to vector<1x1xf32>
    %213 = arith.divf %212, %211 : vector<1x1xf32>
    %214 = vector.shape_cast %213 : vector<1x1xf32> to vector<1x1xf32>
    %215 = vector.broadcast %214 : vector<1x1xf32> to vector<12x1xf32>
    %216 = arith.select %202, %215, %192 : vector<12x1xi1>, vector<12x1xf32>
    %c1_i32_96 = arith.constant 1 : i32
    %217 = vector.broadcast %c1_i32_96 : i32 to vector<2x1xi32>
    %218 = arith.cmpi eq, %171, %217 : vector<2x1xi32>
    %219 = vector.shape_cast %213 : vector<1x1xf32> to vector<1x1xf32>
    %220 = vector.broadcast %219 : vector<1x1xf32> to vector<2x1xf32>
    %221 = arith.select %218, %220, %197 : vector<2x1xi1>, vector<2x1xf32>
    %222 = vector.broadcast %216 : vector<12x1xf32> to vector<12x256xf32>
    %223 = arith.mulf %164, %222 : vector<12x256xf32>
    %c0_97 = arith.constant 0 : index
    %c0_98 = arith.constant 0 : index
    %224 = vector.load %arg11[%c0_97, %c0_98] : memref<12x256xf32, #tpu.memory_space<vmem>>, vector<12x256xf32>
    tpu.vector_store %arg11[%c0_97, %c0_98], %223 {strides = array<i32>} : memref<12x256xf32, #tpu.memory_space<vmem>>, vector<12x256xf32>,
    %225 = arith.mulf %167, %221 : vector<2x1xf32>
    %c0_99 = arith.constant 0 : index
    %c0_100 = arith.constant 0 : index
    %226 = vector.load %arg12[%c0_99, %c0_100] : memref<2x1xf32, #tpu.memory_space<vmem>>, vector<2x1xf32>
    tpu.vector_store %arg12[%c0_99, %c0_100], %225 {strides = array<i32>} : memref<2x1xf32, #tpu.memory_space<vmem>>, vector<2x1xf32>,
    return
  }
  func.func @transform_0(%arg0: i32) -> (i32, i32) {
    %c0_i32 = arith.constant 0 : i32
    %c0_i32_0 = arith.constant 0 : i32
    %c0_i32_1 = arith.constant 0 : i32
    return %c0_i32, %c0_i32_0 : i32, i32
  }
  func.func @transform_1(%arg0: i32) -> (i32, i32) {
    %c0_i32 = arith.constant 0 : i32
    %c0_i32_0 = arith.constant 0 : i32
    %c0_i32_1 = arith.constant 0 : i32
    return %c0_i32, %c0_i32_0 : i32, i32
  }
  func.func @transform_2(%arg0: i32) -> (i32, i32) {
    %c0_i32 = arith.constant 0 : i32
    %c0_i32_0 = arith.constant 0 : i32
    %c0_i32_1 = arith.constant 0 : i32
    return %c0_i32, %c0_i32_0 : i32, i32
  }
  func.func @transform_3(%arg0: i32) -> (i32, i32) {
    %c0_i32 = arith.constant 0 : i32
    %c0_i32_0 = arith.constant 0 : i32
    %c0_i32_1 = arith.constant 0 : i32
    return %c0_i32, %c0_i32_0 : i32, i32
  }
  func.func @transform_4(%arg0: i32) -> (i32, i32) {
    %c0_i32 = arith.constant 0 : i32
    %c0_i32_0 = arith.constant 0 : i32
    %c0_i32_1 = arith.constant 0 : i32
    return %c0_i32, %c0_i32_0 : i32, i32
  }
  func.func @transform_5(%arg0: i32) -> (i32, i32) {
    %c0_i32 = arith.constant 0 : i32
    %c0_i32_0 = arith.constant 0 : i32
    %c0_i32_1 = arith.constant 0 : i32
    return %c0_i32, %c0_i32_0 : i32, i32
  }
  func.func @transform_6(%arg0: i32) -> (i32, i32) {
    %c0_i32 = arith.constant 0 : i32
    %c0_i32_0 = arith.constant 0 : i32
    %c0_i32_1 = arith.constant 0 : i32
    return %c0_i32, %c0_i32_0 : i32, i32
  }
  func.func @transform_7(%arg0: i32) -> (i32, i32) {
    %c0_i32 = arith.constant 0 : i32
    %c0_i32_0 = arith.constant 0 : i32
    %c0_i32_1 = arith.constant 0 : i32
    return %c0_i32, %c0_i32_0 : i32, i32
  }
  func.func @transform_8(%arg0: i32) -> (i32, i32) {
    %c0_i32 = arith.constant 0 : i32
    %c0_i32_0 = arith.constant 0 : i32
    %c0_i32_1 = arith.constant 0 : i32
    return %c0_i32, %c0_i32_0 : i32, i32
  }
  func.func @transform_9(%arg0: i32) -> (i32, i32) {
    %c0_i32 = arith.constant 0 : i32
    %c0_i32_0 = arith.constant 0 : i32
    %c0_i32_1 = arith.constant 0 : i32
    return %c0_i32, %c0_i32_0 : i32, i32
  }
  func.func @transform_10(%arg0: i32) -> (i32, i32) {
    %c0_i32 = arith.constant 0 : i32
    %c0_i32_0 = arith.constant 0 : i32
    %c0_i32_1 = arith.constant 0 : i32
    return %c0_i32, %c0_i32_0 : i32, i32
  }
  func.func @transform_11(%arg0: i32) -> (i32, i32) {
    %c0_i32 = arith.constant 0 : i32
    %c0_i32_0 = arith.constant 0 : i32
    %c0_i32_1 = arith.constant 0 : i32
    return %c0_i32, %c0_i32_0 : i32, i32
  }
}

</mosaic_0001>

<bundles_post_ra>
// kernel: forward.1
= control target key start
LH: loop header
LB: loop body
LE: loop exit
PB: predicated region body
PF: predicated region fallthrough
CT: control target
= control target key end

     0   :  { %vm400_vm0 = vcmask 195584   ;;  %v946_v3 = vmov 0.0   ;;  %v947_v4 = vmov 0   ;;  %vm45_vm1 = vcmask 130048   ;;  %s948_s15 = smov 104   ;;  %s949_s16 = smov 112   ;;  %s1260_s3 = inlined_call_operand.vmem [shape: f32[32,32], index: 3, kind: input, shape index: {}]   ;;  %s1261_s2 = inlined_call_operand.vmem [shape: f32[16,32], index: 2, kind: input, shape index: {}]   ;;  %s1262_s0 = inlined_call_operand.vmem [shape: f32[16,16], index: 0, kind: input, shape index: {}]   ;;  %s1263_s1 = inlined_call_operand.vmem [shape: s32[2,1], index: 1, kind: input, shape index: {}]   ;;  %s1264_s4 = inlined_call_operand.vmem [shape: f32[1,32], index: 4, kind: input, shape index: {}]   ;;  %s1265_s9 = inlined_call_operand.vmem [shape: f32[12,256], index: 9, kind: input, shape index: {}]   ;;  %s1266_s7 = inlined_call_operand.vmem [shape: f32[24,12], index: 7, kind: input, shape index: {}]   ;;  %s1267_s8 = inlined_call_operand.vmem [shape: f32[24,1], index: 8, kind: input, shape index: {}]   ;;  %s1268_s6 = inlined_call_operand.vmem [shape: f32[1,128], index: 6, kind: input, shape index: {}]   ;;  %s1269_s5 = inlined_call_operand.vmem [shape: f32[32,128], index: 5, kind: input, shape index: {}]   ;;  %s1270_s11 = inlined_call_operand.vmem [shape: f32[2,1], index: 11, kind: output, shape index: {1}]   ;;  %s1271_s10 = inlined_call_operand.vmem [shape: f32[12,256], index: 10, kind: output, shape index: {0}]  }
   0x1   :  { %v78_v0 = vld [vmem:[%s1260_s3 + $0x18] sm:$0xff]  ;;  %v40_v1 = vld [vmem:[%s1261_s2 + $0x8] sm:$0xff]  ;;  %v77_v2 = vld [vmem:[%s1260_s3 + $0x10] sm:$0xff]  ;;  %401 = vst.msk [vmem:[#allocation2] sm:$0xff] %vm400_vm0, %v946_v3  ;;  %909 = vset.pattern.permute.xlu0 %v947_v4  ;;  %910 = vset.pattern.permute.xlu1 %v947_v4  ;;  %vm81_vm5 = vcmask 261120   ;;  %vm507_vm15 = vcmask 1043456  }
   0x2   :  { %97 = vmatpush.msra.mxu1 %v78_v0  ;;  %66 = vmatpush.msra.mxu0 %v40_v1  ;;  %v39_v5 = vld [vmem:[%s1261_s2] sm:$0xff]  ;;  %402 = vst.msk [vmem:[#allocation3] sm:$0xff] %vm400_vm0, %v946_v3  ;;  %v76_v7 = vld [vmem:[%s1260_s3 + $0x8] sm:$0xff]  ;;  %v477_v54 = vld [vmem:[%s1265_s9 + $0x10] sm:$0xf]  ;;  %s950_s17 = smov 120  }
   0x3   :  { %v37_v6 = vld [vmem:[%s1262_s0] sm:$0xff]  ;;  %129 = vmatpush.msra.mxu2 %v78_v0  ;;  %166 = vmatpush.msra.mxu3 %v78_v0  ;;  %v38_v37 = vld [vmem:[%s1262_s0 + $0x8] sm:$0xff]  ;;  %v478_v58 = vld [vmem:[%s1265_s9 + $0x18] sm:$0xf]  ;;  %s951_s18 = smov 124   ;;  %s953_s19 = smov 12  }
   0x4   :  { %v79_v8 = vld [vmem:[%s1263_s1] sm:$0x3]  ;;  %98 = vmatpush.msra.mxu1 %v77_v2  ;;  %67 = vmatpush.msra.mxu0 %v39_v5  ;;  %v476_v59 = vld [vmem:[%s1265_s9 + $0x8] sm:$0xff]  ;;  %s954_s20 = smov 84   ;;  %s955_s21 = smov 96  }
   0x5   :  { %v1051_v9 = vadd.s32 4294967295, %v79_v8  ;;  %858 = vmatmul.msk.f32.vlgmr.msra.gmra.mxu0 %vm45_vm1, %v37_v6  ;;  %v75_v10 = vld [vmem:[%s1260_s3] sm:$0xff]  ;;  %130 = vmatpush.msra.mxu2 %v77_v2  ;;  %v473_v60 = vld [vmem:[%s1266_s7 + $0x8] sm:$0xff]  ;;  %v474_v6 = vld [vmem:[%s1266_s7 + $0x10] sm:$0xff]  ;;  %s956_s22 = smov 116   ;;  %s957_s23 = smov 48  }
   0x6   :  { %99 = vmatpush.msra.mxu1 %v76_v7  ;;  %167 = vmatpush.msra.mxu3 %v77_v2  ;;  %v914_v13 = vld [vmem:[%s1264_s4] ss:$0 sm:$0xff]  ;;  %v480_v8 = vld [vmem:[%s1267_s8 + $0x8] sm:$0xff]  ;;  %s958_s24 = smov 60   ;;  %s960_s25 = smov 108  }
   0x7   :  { %vm107_vm2 = vcmp.eq.s32.totalorder %v1051_v9, 0  ;;  %131 = vmatpush.msra.mxu2 %v76_v7  ;;  %911 = vset.pattern.permute.xlu2 %v947_v4  ;;  %vm142_vm3 = vcmp.eq.s32.totalorder %v1051_v9, 1  ;;  %vm179_vm6 = vcmp.eq.s32.totalorder %v1051_v9, 2  ;;  %vm216_vm8 = vcmp.eq.s32.totalorder %v1051_v9, 3  ;;  %v475_v55 = vld [vmem:[%s1265_s9] sm:$0xff]  ;;  %s959_s9 = smov 72  }
   0x8   :  { %v108_v11 = vsel %vm107_vm2, 1, %v947_v4  ;;  %100 = vmatpush.msra.mxu1 %v75_v10  ;;  %168 = vmatpush.msra.mxu3 %v76_v7  ;;  %v143_v12 = vsel %vm142_vm3, 1, %v947_v4  ;;  %v180_v21 = vsel %vm179_vm6, 1, %v947_v4  ;;  %v217_v29 = vsel %vm216_vm8, 1, %v947_v4  ;;  %v472_v57 = vld [vmem:[%s1266_s7] sm:$0xff]  ;;  %s961_s26 = smov 36  }
   0x9   :  { %110 = vperm.xlu0 %909, %v108_v11   ;;  %101 = vmatmul.f32.vlgmr.msra.gmra.mxu1 %v946_v3  ;;  %vm250_vm10 = vcmp.eq.s32.totalorder %v1051_v9, 4  ;;  %vm285_vm12 = vcmp.eq.s32.totalorder %v1051_v9, 5  ;;  %vm322_vm14 = vcmp.eq.s32.totalorder %v1051_v9, 6  ;;  %vm359_vm3 = vcmp.eq.s32.totalorder %v1051_v9, 7  ;;  %v479_v11 = vld [vmem:[%s1267_s8] sm:$0xff]  ;;  %s963_s2 = smov 24  }
   0xa   :  { %132 = vmatpush.msra.mxu2 %v75_v10  ;;  %203 = vmatpush.msrb.mxu1 %v78_v0  ;;  %v251_v38 = vsel %vm250_vm10, 1, %v947_v4  ;;  %v286_v46 = vsel %vm285_vm12, 1, %v947_v4  ;;  %v323_v56 = vsel %vm322_vm14, 1, %v947_v4  ;;  %vm403_vm8 = vcmask 191488  }
   0xb   :  { %309 = vmatpush.msrb.mxu0 %v78_v0  ;;  %169 = vmatpush.msra.mxu3 %v75_v10  ;;  %404 = vst.msk [vmem:[#allocation3 + $0x8] sm:$0xf] %vm403_vm8, %v946_v3  ;;  %vm423_vm10 = vcmask 90112  }
   0xc   :  { %240 = vmatpush.msrb.mxu2 %v78_v0  ;;  %204 = vmatpush.msrb.mxu1 %v77_v2 }
   0xd   :  { %272 = vmatpush.msrb.mxu3 %v78_v0  ;;  %310 = vmatpush.msrb.mxu0 %v77_v2 }
   0xe   :  { %241 = vmatpush.msrb.mxu2 %v77_v2  ;;  %205 = vmatpush.msrb.mxu1 %v76_v7 }
   0xf   :  { %273 = vmatpush.msrb.mxu3 %v77_v2  ;;  %311 = vmatpush.msrb.mxu0 %v76_v7 }
  0x10   :  { %242 = vmatpush.msrb.mxu2 %v76_v7  ;;  %206 = vmatpush.msrb.mxu1 %v75_v10 }
  0x11   :  { %274 = vmatpush.msrb.mxu3 %v76_v7  ;;  %312 = vmatpush.msrb.mxu0 %v75_v10 }
  0x12   :  { %243 = vmatpush.msrb.mxu2 %v75_v10  ;;  %346 = vmatpush.msra.mxu1 %v78_v0 }
  0x13   :  { %275 = vmatpush.msrb.mxu3 %v75_v10  ;;  %145 = vperm.xlu0 %909, %v143_v12  }
  0x14   :  { %347 = vmatpush.msra.mxu1 %v77_v2  ;;  %182 = vperm.xlu1 %910, %v180_v21  }
  0x15   :  { %859 = vmatmul.msk.f32.gmra.mxu0 %vm45_vm1, %v38_v37  ;;  %253 = vperm.xlu2 %911, %v251_v38   ;;  %vm497_vm1 = vcmask 97280  }
  0x16   :  { %348 = vmatpush.msra.mxu1 %v76_v7  ;;  %873 = vmatpush.msk.msra.mxu0 %vm507_vm15, %v478_v58  ;;  %v360_v7 = vsel %vm359_vm3, 1, %v947_v4 }
  0x18   :  { %349 = vmatpush.msra.mxu1 %v75_v10  ;;  %555 = vmatpush.msra.mxu0 %v476_v59  ;;  %v481_v10 = vld [vmem:[%s1267_s8 + $0x10] sm:$0xff] }
  0x1b   :  { %325 = vperm.xlu0 %909, %v323_v56  }
  0x1c   :  { %219 = vperm.xlu1 %910, %v217_v29  }
  0x1d   :  { %288 = vperm.xlu2 %911, %v286_v46  }
  0x23   :  { %489 = vperm.xlu0 %909, %v480_v8  }
  0x24   :  { %362 = vperm.xlu1 %910, %v360_v7  }
  0x25   :  { %494 = vperm.xlu2 %911, %v481_v10  }
  0x2c   :  { %484 = vperm.xlu1 %910, %v479_v11  }
  0x6f   :  { %v254_v51 = vpop.permute.xlu2 %253 }
  0x70   :  { %vm255_vm13 = vcmp.eq.s32.totalorder %v254_v51, 1 }
  0x77   :  { %v289_v0 = vpop.permute.xlu2 %288 }
  0x78   :  { %vm290_vm2 = vcmp.eq.s32.totalorder %v289_v0, 1 }
  0x7b   :  { %v111_v18 = vpop.permute.xlu0 %110 }
  0x7c   :  { %vm112_vm4 = vcmp.eq.s32.totalorder %v111_v18, 1  ;;  %v372_v18 = vld [vmem:[%s1269_s5 + $0x18] sm:$0xff] }
  0x82   :  { %v69_v14 = vpop.f32.mrf.mxu0 }
  0x83   :  { %v70_v15 = vadd.f32 %v914_v13, %v69_v14 }
  0x85   :  { %v146_v25 = vpop.permute.xlu0 %145 }
  0x86   :  { %v102_v16 = vpop.f32.mrf.mxu1  ;;  %vm147_vm7 = vcmp.eq.s32.totalorder %v146_v25, 1  ;;  %v183_v33 = vpop.permute.xlu1 %182 }
  0x87   :  { %v105_v17 = vadd.f32 %v102_v16, %v70_v15  ;;  %vm184_vm9 = vcmp.eq.s32.totalorder %v183_v33, 1  ;;  %v369_v33 = vld [vmem:[%s1269_s5] sm:$0xff] }
  0x89   :  { %916 = vtanh.f32 %v105_v17 }
  0x8e   :  { %v220_v42 = vpop.permute.xlu1 %219 }
  0x8f   :  { %v917_v19 = vpop.eup %916  ;;  %vm221_vm11 = vcmp.eq.s32.totalorder %v220_v42, 1 }
  0x90   :  { %v113_v20 = vsel %vm112_vm4, %v917_v19, 0.0  ;;  %861 = vmatmul.msk.f32.vlgmr.msra.gmra.mxu2 %vm81_vm5, %v917_v19  ;;  %v371_v19 = vld [vmem:[%s1269_s5 + $0x10] sm:$0xff] }
  0x91   :  { %392 = vmatpush.msra.mxu2 %v372_v18 }
  0x92   :  { %v72_v47 = vpop.f32.mrf.mxu0 }
  0x93   :  { %v1082_v48 = vadd.f32 %v914_v13, %v72_v47  ;;  %v326_v13 = vpop.permute.xlu0 %325  ;;  %393 = vmatpush.msra.mxu2 %v371_v19 }
  0x94   :  { %vm327_vm4 = vcmp.eq.s32.totalorder %v326_v13, 1 }
 0x113   :  { %v134_v22 = vpop.f32.mrf.mxu2 }
 0x114   :  { %v138_v23 = vrot.slane %v134_v22, 6 }
 0x116   :  { %v140_v24 = vadd.f32 %v138_v23, %v70_v15  ;;  %v495_v23 = vpop.permute.xlu2 %494 }
 0x118   :  { %918 = vtanh.f32 %v140_v24 }
 0x11e   :  { %v919_v26 = vpop.eup %918 }
 0x11f   :  { %v149_v27 = vrot.slane %v919_v26, 2  ;;  %v363_v26 = vpop.permute.xlu1 %362 }
 0x120   :  { %vm364_vm6 = vcmp.eq.s32.totalorder %v363_v26, 1 }
 0x121   :  { %v151_v28 = vsel %vm147_vm7, %v149_v27, %v113_v20  ;;  %862 = vmatmul.msk.f32.vlgmr.msra.gmra.mxu3 %vm81_vm5, %v149_v27  ;;  %v490_v27 = vpop.permute.xlu0 %489  ;;  %vm405_vm7 = vcmask 57344  }
 0x122   :  { %869 = vmatpush.msk.msra.mxu3 %vm507_vm15, %v477_v54 }
 0x124   :  { %529 = vmatpush.msra.mxu3 %v475_v55 }
 0x1a4   :  { %v171_v30 = vpop.f32.mrf.mxu3 }
 0x1a5   :  { %v175_v31 = vrot.slane %v171_v30, 4  ;;  %v370_v30 = vld [vmem:[%s1269_s5 + $0x8] sm:$0xff] }
 0x1a6   :  { %394 = vmatpush.msra.mxu2 %v370_v30 }
 0x1a7   :  { %v177_v32 = vadd.f32 %v175_v31, %v70_v15 }
 0x1a8   :  { %395 = vmatpush.msra.mxu2 %v369_v33 }
 0x1a9   :  { %920 = vtanh.f32 %v177_v32 }
 0x1af   :  { %v921_v34 = vpop.eup %920 }
 0x1b0   :  { %v186_v35 = vrot.slane %v921_v34, 4  ;;  %v485_v34 = vpop.permute.xlu1 %484 }
 0x1b2   :  { %v188_v36 = vsel %vm184_vm9, %v186_v35, %v151_v28  ;;  %863 = vmatmul.msk.f32.vlgmr.msrb.gmra.mxu1 %vm81_vm5, %v186_v35  ;;  %vm448_vm9 = vcmask 156769  }
 0x22f   :  { %v208_v39 = vpop.f32.mrf.mxu1 }
 0x230   :  { %v212_v40 = vrot.slane %v208_v39, 2 }
 0x232   :  { %v214_v41 = vadd.f32 %v212_v40, %v70_v15 }
 0x234   :  { %922 = vtanh.f32 %v214_v41 }
 0x23a   :  { %v923_v43 = vpop.eup %922 }
 0x23b   :  { %v223_v44 = vrot.slane %v923_v43, 6  ;;  %v915_v43 = vld [vmem:[%s1268_s6] ss:$0 sm:$0xff]  ;;  %s952_s6 = smov 4  }
 0x23d   :  { %v225_v45 = vsel %vm221_vm11, %v223_v44, %v188_v36  ;;  %864 = vmatmul.msk.f32.vlgmr.msrb.gmra.mxu2 %vm81_vm5, %v223_v44  ;;  %vm465_vm11 = vcmask 189537  }
 0x2c0   :  { %v245_v49 = vpop.f32.mrf.mxu2 }
 0x2c1   :  { %v248_v50 = vadd.f32 %v245_v49, %v1082_v48 }
 0x2c3   :  { %924 = vtanh.f32 %v248_v50 }
 0x2c9   :  { %v925_v52 = vpop.eup %924 }
 0x2ca   :  { %v256_v53 = vsel %vm255_vm13, %v925_v52, %v225_v45  ;;  %865 = vmatmul.msk.f32.vlgmr.msrb.gmra.mxu3 %vm81_vm5, %v925_v52  ;;  %vm747_vm13 = vcmask 7168  }
 0x2d2   :  { %870 = vmatmul.msk.f32.vlgmr.msra.gmra.mxu3 %vm497_vm1, %v472_v57 }
 0x2da   :  { %871 = vmatmul.msk.f32.gmra.mxu3 %vm497_vm1, %v473_v60 }
 0x2e2   :  { %872 = vmatmul.msk.f32.gmra.mxu3 %vm497_vm1, %v474_v6 }
 0x34d   :  { %v277_v61 = vpop.f32.mrf.mxu3 }
 0x34e   :  { %v281_v62 = vrot.slane %v277_v61, 6 }
 0x350   :  { %v283_v63 = vadd.f32 %v281_v62, %v1082_v48 }
 0x352   :  { %926 = vtanh.f32 %v283_v63 }
 0x355   :  { %v531_v20 = vpop.f32.mrf.mxu3 }
 0x356   :  { %v1144_v35 = vadd.f32 %v531_v20, %v485_v34 }
 0x358   :  { %v927_v1 = vpop.eup %926 }
 0x359   :  { %v292_v2 = vrot.slane %v927_v1, 2 }
 0x35b   :  { %v294_v5 = vsel %vm290_vm2, %v292_v2, %v256_v53  ;;  %866 = vmatmul.msk.f32.vlgmr.msrb.gmra.mxu0 %vm81_vm5, %v292_v2 }
 0x35d   :  { %v534_v22 = vpop.f32.mrf.mxu3 }
 0x35e   :  { %v535_v28 = vadd.f32 %v534_v22, %v490_v27 }
 0x360   :  { %568 = vst [vmem:[#allocation4 + $0x8] sm:$0xff] %v535_v28 }
 0x363   :  { %874 = vmatmul.msk.f32.vlgmr.msra.gmra.mxu0 %vm497_vm1, %v472_v57 }
 0x365   :  { %v537_v31 = vpop.f32.mrf.mxu3 }
 0x366   :  { %v538_v32 = vadd.f32 %v537_v31, %v495_v23 }
 0x368   :  { %570 = vst [vmem:[#allocation4 + $0x18] sm:$0xff] %v538_v32  ;;  %595 = vmatpush.msrb.mxu1 %v538_v32 }
 0x36a   :  { %596 = vmatpush.msrb.mxu1 %v535_v28 }
 0x36b   :  { %875 = vmatmul.msk.f32.gmra.mxu0 %vm497_vm1, %v473_v60 }
 0x36c   :  { %597 = vmatpush.msrb.mxu1 %v1144_v35 }
 0x373   :  { %876 = vmatmul.msk.f32.gmra.mxu0 %vm497_vm1, %v474_v6 }
 0x3d8   :  { %v314_v12 = vpop.f32.mrf.mxu0 }
 0x3d9   :  { %v318_v9 = vrot.slane %v314_v12, 4 }
 0x3db   :  { %v320_v4 = vadd.f32 %v318_v9, %v1082_v48 }
 0x3dd   :  { %928 = vtanh.f32 %v320_v4 }
 0x3e0   :  { %v557_v17 = vpop.f32.mrf.mxu0 }
 0x3e1   :  { %v1146_v36 = vadd.f32 %v557_v17, %v485_v34 }
 0x3e3   :  { %v929_v14 = vpop.eup %928 }
 0x3e4   :  { %v329_v15 = vrot.slane %v929_v14, 4 }
 0x3e6   :  { %v331_v16 = vsel %vm327_vm4, %v329_v15, %v294_v5  ;;  %867 = vmatmul.msk.f32.vlgmr.msra.gmra.mxu1 %vm81_vm5, %v329_v15 }
 0x3e8   :  { %v560_v21 = vpop.f32.mrf.mxu0 }
 0x3e9   :  { %v561_v29 = vadd.f32 %v560_v21, %v490_v27 }
 0x3eb   :  { %569 = vst [vmem:[#allocation4] sm:$0xff] %v561_v29 }
 0x3f0   :  { %v563_v24 = vpop.f32.mrf.mxu0 }
 0x3f1   :  { %v564_v25 = vadd.f32 %v563_v24, %v495_v23 }
 0x3f3   :  { %571 = vst [vmem:[#allocation4 + $0x20] sm:$0xff] %v564_v25  ;;  %615 = vmatpush.msrb.mxu2 %v564_v25 }
 0x3f5   :  { %616 = vmatpush.msrb.mxu2 %v561_v29 }
 0x3f7   :  { %617 = vmatpush.msrb.mxu2 %v1146_v36 }
 0x463   :  { %v351_v37 = vpop.f32.mrf.mxu1 }
 0x464   :  { %v355_v38 = vrot.slane %v351_v37, 2 }
 0x466   :  { %v357_v39 = vadd.f32 %v355_v38, %v1082_v48 }
 0x468   :  { %930 = vtanh.f32 %v357_v39 }
 0x46e   :  { %v931_v40 = vpop.eup %930 }
 0x46f   :  { %v366_v41 = vrot.slane %v931_v40, 6 }
 0x471   :  { %v368_v42 = vsel %vm364_vm6, %v366_v41, %v331_v16 }
 0x472   :  { %868 = vmatmul.msk.f32.vlgmr.msra.gmra.mxu2 %vm81_vm5, %v368_v42  ;;  %vm700_vm5 = vcmask 853824  }
 0x4f5   :  { %v397_v44 = vpop.f32.mrf.mxu2 }
 0x4f6   :  { %v1155_v45 = vadd.f32 %v915_v43, %v397_v44 }
 0x4f8   :  { %416 = vrot.lane.b32.xlu1 %v1155_v45, %s948_s15  ;;  %412 = vrot.lane.b32.xlu0 %v1155_v45, %s949_s16  ;;  %406 = vst.msk [vmem:[#allocation2] sm:$0x1] %vm405_vm7, %v1155_v45  ;;  %v701_v46 = vsel %vm700_vm5, %v1155_v45, -inf }
 0x4f9   :  { %408 = vrot.lane.b32.xlu2 %v1155_v45, %s950_s17 }
 0x500   :  { %454 = vrot.lane.b32.xlu1 %v1155_v45, %s951_s18  ;;  %450 = vrot.lane.b32.xlu0 %v1155_v45, %s952_s6 }
 0x501   :  { %445 = vrot.lane.b32.xlu2 %v1155_v45, %s953_s19 }
 0x508   :  { %425 = vrot.lane.b32.xlu1 %v1155_v45, %s954_s20  ;;  %420 = vrot.lane.b32.xlu0 %v1155_v45, %s955_s21 }
 0x509   :  { %458 = vrot.lane.b32.xlu2 %v1155_v45, %s956_s22 }
 0x510   :  { %437 = vrot.lane.b32.xlu1 %v1155_v45, %s957_s23  ;;  %433 = vrot.lane.b32.xlu0 %v1155_v45, %s958_s24 }
 0x511   :  { %429 = vrot.lane.b32.xlu2 %v1155_v45, %s959_s9 }
 0x518   :  { %462 = vrot.lane.b32.xlu0 %v1155_v45, %s960_s25 }
 0x519   :  { %441 = vrot.lane.b32.xlu2 %v1155_v45, %s961_s26 }
 0x542   :  { %702 = vmax.xlane.f32.xlu2 %v701_v46 }
 0x553   :  { %v409_v47 = vpop.permute.xlu2 %408 }
 0x554   :  { %411 = vst.msk [vmem:[#allocation2 + $0x1] sm:$0x1] %vm405_vm7, %v409_v47  ;;  %v736_v47 = vlaneseq }
 0x55b   :  { %v446_v48 = vpop.permute.xlu2 %445 }
 0x55c   :  { %449 = vst.msk [vmem:[#allocation2 + $0x3] sm:$0x2] %vm448_vm9, %v446_v48  ;;  %v1218_v48 = vshrl.u32 %v736_v47, 7 }
 0x55e   :  { %vm741_vm12 = vcmp.lt.s32.totalorder %v1218_v48, 6 }
 0x563   :  { %v459_v49 = vpop.permute.xlu2 %458 }
 0x564   :  { %461 = vst.msk [vmem:[#allocation2 + $0x6] sm:$0x2] %vm448_vm9, %v459_v49  ;;  %v1221_v49 = vadd.s32 8, %v1218_v48 }
 0x566   :  { %vm786_vm14 = vcmp.lt.s32.totalorder %v1221_v49, 12 }
 0x56a   :  { %v417_v50 = vpop.permute.xlu1 %416  ;;  %v413_v51 = vpop.permute.xlu0 %412 }
 0x56b   :  { %419 = vst.msk [vmem:[#allocation2 + $0x3] sm:$0x1] %vm405_vm7, %v417_v50  ;;  %v430_v52 = vpop.permute.xlu2 %429 }
 0x56c   :  { %415 = vst.msk [vmem:[#allocation2 + $0x2] sm:$0x1] %vm405_vm7, %v413_v51 }
 0x56d   :  { %432 = vst.msk [vmem:[#allocation3 + $0x2] sm:$0x1] %vm423_vm10, %v430_v52 }
 0x56e   :  { %469 = vst.msk [vmem:[#allocation3 + $0x8] sm:$0x2] %vm465_vm11, %v430_v52 }
 0x572   :  { %v455_v3 = vpop.permute.xlu1 %454  ;;  %v451_v53 = vpop.permute.xlu0 %450 }
 0x573   :  { %457 = vst.msk [vmem:[#allocation2 + $0x5] sm:$0x2] %vm448_vm9, %v455_v3  ;;  %v442_v54 = vpop.permute.xlu2 %441 }
 0x574   :  { %453 = vst.msk [vmem:[#allocation2 + $0x4] sm:$0x2] %vm448_vm9, %v451_v53  ;;  %vm781_vm9 = vcmp.eq.s32.totalorder %v1218_v48, 0 }
 0x575   :  { %444 = vst.msk [vmem:[#allocation3 + $0x5] sm:$0x1] %vm423_vm10, %v442_v54 }
 0x57a   :  { %v426_v55 = vpop.permute.xlu1 %425  ;;  %v421_v56 = vpop.permute.xlu0 %420 }
 0x57b   :  { %428 = vst.msk [vmem:[#allocation3 + $0x1] sm:$0x1] %vm423_vm10, %v426_v55  ;;  %v572_v57 = vld [vmem:[#allocation2] sm:$0xff] }
 0x57c   :  { %468 = vst.msk [vmem:[#allocation3 + $0x7] sm:$0x2] %vm465_vm11, %v426_v55  ;;  %877 = vmatmul.msk.f32.vlgmr.msrb.gmra.mxu1 %vm400_vm0, %v572_v57  ;;  %878 = vmatmul.msk.f32.vlgmr.msrb.gmra.mxu2 %vm400_vm0, %v572_v57 }
 0x57d   :  { %424 = vst.msk [vmem:[#allocation3] sm:$0x1] %vm423_vm10, %v421_v56 }
 0x57e   :  { %467 = vst.msk [vmem:[#allocation3 + $0x6] sm:$0x2] %vm465_vm11, %v421_v56 }
 0x582   :  { %v438_v58 = vpop.permute.xlu1 %437  ;;  %v434_v59 = vpop.permute.xlu0 %433 }
 0x583   :  { %440 = vst.msk [vmem:[#allocation3 + $0x4] sm:$0x1] %vm423_vm10, %v438_v58 }
 0x584   :  { %471 = vst.msk [vmem:[#allocation3 + $0xa] sm:$0x2] %vm465_vm11, %v438_v58 }
 0x585   :  { %436 = vst.msk [vmem:[#allocation3 + $0x3] sm:$0x1] %vm423_vm10, %v434_v59  ;;  %vm823_vm10 = vcmp.eq.s32.totalorder %v1218_v48, 1 }
 0x586   :  { %470 = vst.msk [vmem:[#allocation3 + $0x9] sm:$0x2] %vm465_vm11, %v434_v59 }
 0x58a   :  { %v463_v60 = vpop.permute.xlu0 %462 }
 0x58b   :  { %466 = vst.msk [vmem:[#allocation3 + $0x5] sm:$0x2] %vm465_vm11, %v463_v60  ;;  %vm848_vm11 = vcmask 1024  }
 0x58d   :  { %v627_v6 = vld [vmem:[#allocation3 + $0x8] sm:$0xf] }
 0x592   :  { %v626_v1 = vld [vmem:[#allocation3] sm:$0xff] }
 0x5b5   :  { %v703_v15 = vpop.xlane.xlu2 %702 }
 0x5b6   :  { %v704_v16 = vrot.slane %v703_v15, 4 }
 0x5b8   :  { %v705_v17 = vmax.f32 %v703_v15, %v704_v16 }
 0x5ba   :  { %v706_v18 = vrot.slane %v705_v17, 2 }
 0x5bc   :  { %v707_v22 = vmax.f32 %v705_v17, %v706_v18 }
 0x5be   :  { %v708_v25 = vrot.slane %v707_v22, 1 }
 0x5c0   :  { %v709_v28 = vmax.f32 %v707_v22, %v708_v25 }
 0x5f9   :  { %v599_v61 = vpop.f32.mrf.mxu1 }
 0x5fa   :  { %622 = vst [vmem:[#allocation4 + $0x8] sm:$0xf] %v599_v61 }
 0x5fb   :  { %624 = vst [vmem:[#allocation4 + $0x18] sm:$0xf0] %v599_v61 }
 0x5ff   :  { %v619_v62 = vpop.f32.mrf.mxu2 }
 0x600   :  { %623 = vst [vmem:[#allocation4] sm:$0xf] %v619_v62 }
 0x601   :  { %625 = vst [vmem:[#allocation4 + $0x20] sm:$0xf0] %v619_v62  ;;  %v630_v0 = vld [vmem:[#allocation4 + $0x8] sm:$0xff] }
 0x602   :  { %v632_v63 = vld [vmem:[#allocation4 + $0x18] sm:$0xff] }
 0x603   :  { %653 = vmatpush.msra.mxu1 %v632_v63 }
 0x605   :  { %654 = vmatpush.msra.mxu1 %v630_v0 }
 0x607   :  { %655 = vmatpush.msra.mxu1 %v1144_v35  ;;  %v631_v5 = vld [vmem:[#allocation4] sm:$0xff] }
 0x608   :  { %879 = vmatmul.msk.f32.vlgmr.msra.gmra.mxu1 %vm400_vm0, %v626_v1  ;;  %v633_v2 = vld [vmem:[#allocation4 + $0x20] sm:$0xff] }
 0x609   :  { %676 = vmatpush.msra.mxu2 %v633_v2 }
 0x60b   :  { %677 = vmatpush.msra.mxu2 %v631_v5 }
 0x60d   :  { %678 = vmatpush.msra.mxu2 %v1146_v36 }
 0x60e   :  { %881 = vmatmul.msk.f32.vlgmr.msra.gmra.mxu2 %vm400_vm0, %v626_v1 }
 0x610   :  { %880 = vmatmul.msk.f32.gmra.mxu1 %vm400_vm0, %v627_v6 }
 0x616   :  { %882 = vmatmul.msk.f32.gmra.mxu2 %vm400_vm0, %v627_v6  ;;  %vm783_vm0 = vcmp.ge.s32.totalorder %v1218_v48, 6 }
 0x685   :  { %v657_v7 = vpop.f32.mrf.mxu1 }
 0x68d   :  { %v660_v10 = vpop.f32.mrf.mxu1 }
 0x68e   :  { %v686_v12 = vsel %vm507_vm15, %v660_v10, -inf }
 0x691   :  { %v680_v8 = vpop.f32.mrf.mxu2 }
 0x692   :  { %v688_v4 = vmax.f32 %v657_v7, %v680_v8 }
 0x699   :  { %v683_v11 = vpop.f32.mrf.mxu2 }
 0x69a   :  { %v687_v9 = vsel %vm507_vm15, %v683_v11, -inf }
 0x69b   :  { %v689_v13 = vmax.f32 %v686_v12, %v687_v9  ;;  %v962_v12 = vmov 104  }
 0x69c   :  { %913 = vset.pattern.permute.xlu1 %v962_v12  ;;  %912 = vset.pattern.permute.xlu0 %v962_v12 }
 0x69d   :  { %v690_v14 = vmax.f32 %v688_v4, %v689_v13 }
 0x69f   :  { %691 = vmax.xlane.f32.xlu1 %v690_v14 }
 0x712   :  { %v692_v19 = vpop.xlane.xlu1 %691 }
 0x713   :  { %v693_v20 = vrot.slane %v692_v19, 4 }
 0x715   :  { %v694_v21 = vmax.f32 %v692_v19, %v693_v20 }
 0x717   :  { %v695_v23 = vrot.slane %v694_v21, 2 }
 0x719   :  { %v696_v24 = vmax.f32 %v694_v21, %v695_v23 }
 0x71b   :  { %v697_v26 = vrot.slane %v696_v24, 1 }
 0x71d   :  { %v698_v27 = vmax.f32 %v696_v24, %v697_v26 }
 0x71f   :  { %883 = vpush %v698_v27 }
 0x720   :  { %885 = vpush %v709_v28 }
 0x750   :  { %s884_s27 = spop %883 }
 0x751   :  { %s886_s28 = spop %885 }
 0x752   :  { %s711_s29 = smax.f32 %s886_s28, %s884_s27 }
 0x753   :  { %v712_v29 = vstv %s711_s29 }
 0x754   :  { %v713_v30 = vsub.f32 %v657_v7, %v712_v29  ;;  %v714_v31 = vsub.f32 %v680_v8, %v712_v29  ;;  %v715_v32 = vsub.f32 %v660_v10, %v712_v29  ;;  %v716_v33 = vsub.f32 %v683_v11, %v712_v29 }
 0x755   :  { %v725_v11 = vsub.f32 %v1155_v45, %v712_v29 }
 0x756   :  { %v717_v34 = vmul.f32 1.442695, %v713_v30  ;;  %v719_v35 = vmul.f32 1.442695, %v714_v31  ;;  %v721_v36 = vmul.f32 1.442695, %v715_v32 }
 0x757   :  { %v723_v37 = vmul.f32 1.442695, %v716_v33  ;;  %v726_v9 = vmul.f32 1.442695, %v725_v11 }
 0x758   :  { %932 = vpow2.f32 %v717_v34 }
 0x759   :  { %934 = vpow2.f32 %v719_v35 }
 0x75a   :  { %936 = vpow2.f32 %v721_v36 }
 0x75b   :  { %938 = vpow2.f32 %v723_v37 }
 0x75c   :  { %940 = vpow2.f32 %v726_v9 }
 0x75e   :  { %v1204_v38 = vpop.eup %932 }
 0x75f   :  { %v1206_v39 = vpop.eup %934 }
 0x760   :  { %v1208_v40 = vpop.eup %936  ;;  %v728_v41 = vadd.f32 %v1206_v39, %v1204_v38 }
 0x761   :  { %v1212_v42 = vpop.eup %938  ;;  %v731_v43 = vsel %vm507_vm15, %v1208_v40, 0.0 }
 0x762   :  { %729 = vadd.xlane.f32.xlu0 %v728_v41  ;;  %v732_v44 = vsel %vm507_vm15, %v1212_v42, 0.0  ;;  %vm749_vm15 = vcmask 3072   ;;  %v941_v4 = vpop.eup %940 }
 0x763   :  { %v733_v46 = vadd.f32 %v732_v44, %v731_v43 }
 0x765   :  { %734 = vadd.xlane.f32.xlu2 %v733_v46 }
 0x7d5   :  { %v730_v50 = vpop.xlane.xlu0 %729 }
 0x7d6   :  { %v789_v51 = vsel %vm783_vm0, %v730_v50, 0.0  ;;  %v745_v52 = vsel %vm741_vm12, %v730_v50, 0.0 }
 0x7d7   :  { %v748_v3 = vsel %vm747_vm13, %v745_v52, 0.0  ;;  %v791_v54 = vsel %vm747_vm13, %v789_v51, 0.0 }
 0x7d8   :  { %v735_v53 = vpop.xlane.xlu2 %734  ;;  %752 = vadd.xlane.f32.xlu1 %v748_v3 }
 0x7d9   :  { %v790_v55 = vsel %vm786_vm14, %v735_v53, 0.0 }
 0x7da   :  { %v792_v56 = vsel %vm749_vm15, %v790_v55, 0.0 }
 0x7db   :  { %v793_v57 = vadd.f32 %v792_v56, %v791_v54 }
 0x7dd   :  { %794 = vadd.xlane.f32.xlu2 %v793_v57 }
 0x84b   :  { %v753_v58 = vpop.xlane.xlu1 %752 }
 0x84c   :  { %v754_v59 = vrot.slane %v753_v58, 4 }
 0x84e   :  { %v755_v60 = vadd.f32 %v754_v59, %v753_v58 }
 0x850   :  { %v756_v61 = vrot.slane %v755_v60, 2  ;;  %v795_v62 = vpop.xlane.xlu2 %794 }
 0x851   :  { %v796_v63 = vrot.slane %v795_v62, 4 }
 0x852   :  { %v757_v0 = vadd.f32 %v756_v61, %v755_v60 }
 0x853   :  { %v797_v1 = vadd.f32 %v796_v63, %v795_v62 }
 0x854   :  { %v758_v2 = vrot.slane %v757_v0, 1 }
 0x855   :  { %v798_v5 = vrot.slane %v797_v1, 2 }
 0x856   :  { %v759_v6 = vadd.f32 %v758_v2, %v757_v0 }
 0x857   :  { %v799_v7 = vadd.f32 %v798_v5, %v797_v1 }
 0x858   :  { %887 = vpush %v759_v6 }
 0x859   :  { %v800_v8 = vrot.slane %v799_v7, 1 }
 0x85b   :  { %v801_v10 = vadd.f32 %v800_v8, %v799_v7 }
 0x85d   :  { %889 = vpush %v801_v10 }
 0x889   :  { %s888_s7 = spop %887 }
 0x88a   :  { %v761_v13 = vstv %s888_s7 }
 0x88b   :  { %v762_v14 = vadd.f32 %v941_v4, %v761_v13 }
 0x88d   :  { %942 = vrcp.f32 %v762_v14  ;;  %v774_v20 = vand.u32 2147483648, %v762_v14  ;;  %v772_v22 = vand.u32 2147483647, %v762_v14  ;;  %vm768_vm2 = vweird.f32 %v762_v14 }
 0x88e   :  { %s890_s30 = spop %889 }
 0x88f   :  { %v803_v15 = vstv %s890_s30  ;;  %v775_v26 = vor.u32 1.1754944e-38, %v774_v20  ;;  %vm773_vm4 = vcmp.eq.f32.partialorder %v772_v22, 8.507059e+37 }
 0x890   :  { %v804_v16 = vadd.f32 %v941_v4, %v803_v15 }
 0x892   :  { %944 = vrcp.f32 %v804_v16  ;;  %v816_v27 = vand.u32 2147483648, %v804_v16  ;;  %v814_v30 = vand.u32 2147483647, %v804_v16  ;;  %vm810_vm7 = vweird.f32 %v804_v16 }
 0x893   :  { %v943_v17 = vpop.eup %942 }
 0x894   :  { %v764_v18 = vmul.f32 %v943_v17, %v762_v14  ;;  %vm769_vm1 = vweird.f32 %v943_v17  ;;  %v817_v33 = vor.u32 1.1754944e-38, %v816_v27  ;;  %vm815_vm8 = vcmp.eq.f32.partialorder %v814_v30, 8.507059e+37 }
 0x895   :  { %vm770_vm3 = vmor %vm768_vm2, %vm769_vm1 }
 0x896   :  { %v765_v19 = vsub.f32 1.0, %v764_v18 }
 0x898   :  { %v945_v21 = vpop.eup %944  ;;  %v766_v45 = vmul.f32 %v943_v17, %v765_v19 }
 0x899   :  { %v806_v23 = vmul.f32 %v945_v21, %v804_v16  ;;  %vm811_vm6 = vweird.f32 %v945_v21 }
 0x89a   :  { %v767_v24 = vadd.f32 %v943_v17, %v766_v45  ;;  %vm812_vm5 = vmor %vm810_vm7, %vm811_vm6 }
 0x89b   :  { %v807_v25 = vsub.f32 1.0, %v806_v23 }
 0x89c   :  { %v771_v28 = vsel %vm770_vm3, %v943_v17, %v767_v24 }
 0x89d   :  { %v808_v29 = vmul.f32 %v945_v21, %v807_v25  ;;  %v776_v31 = vsel %vm773_vm4, %v775_v26, %v771_v28 }
 0x89e   :  { %v778_v34 = vperm.slane %v776_v31, 0 }
 0x89f   :  { %v809_v32 = vadd.f32 %v945_v21, %v808_v29 }
 0x8a0   :  { %v779_v41 = vsel %vm741_vm12, %v778_v34, 0.0  ;;  %v782_v43 = vsel %vm781_vm9, %v778_v34, 0.0 }
 0x8a1   :  { %v813_v35 = vsel %vm812_vm5, %v945_v21, %v809_v32 }
 0x8a2   :  { %v818_v36 = vsel %vm815_vm8, %v817_v33, %v813_v35 }
 0x8a3   :  { %v820_v37 = vperm.slane %v818_v36, 1 }
 0x8a5   :  { %v822_v44 = vsel %vm786_vm14, %v820_v37, 0.0  ;;  %v821_v46 = vsel %vm783_vm0, %v820_v37, %v779_v41  ;;  %v824_v47 = vsel %vm823_vm10, %v820_v37, %v782_v43 }
 0x8a6   :  { %832 = vperm.xlu1 %913, %v822_v44   ;;  %827 = vperm.xlu0 %912, %v821_v46   ;;  %v843_v50 = vmul.f32 %v941_v4, %v824_v47 }
 0x8a8   :  { %845 = vrot.lane.b32.xlu2 %v843_v50, %s963_s2 }
 0x902   :  { %v846_v51 = vpop.permute.xlu2 %845 }
 0x903   :  { %849 = vst.msk [vmem:[%s1270_s11] sm:$0x3] %vm848_vm11, %v846_v51 }
 0x918   :  { %v833_v52 = vpop.permute.xlu1 %832  ;;  %v828_v3 = vpop.permute.xlu0 %827 }
 0x919   :  { %v837_v49 = vmul.f32 %v1208_v40, %v833_v52  ;;  %v838_v53 = vmul.f32 %v1212_v42, %v833_v52  ;;  %v835_v48 = vmul.f32 %v1204_v38, %v828_v3  ;;  %v836_v54 = vmul.f32 %v1206_v39, %v828_v3 }
 0x91b   :  { %841 = vst [vmem:[%s1271_s10 + $0x10] sm:$0xf] %v837_v49 }
 0x91c   :  { %842 = vst [vmem:[%s1271_s10 + $0x18] sm:$0xf] %v838_v53 }
 0x91d   :  { %839 = vst [vmem:[%s1271_s10] sm:$0xff] %v835_v48 }
 0x91e   :  { %840 = vst [vmem:[%s1271_s10 + $0x8] sm:$0xff] %v836_v54 }

</bundles_post_ra>
